<compile_context>
chip_gen: v5e
topology: v5e:2x2
jax: 0.10.0
libtpu: 0.0.40
codegen_flags: <defaults>
</compile_context>

<pallas_src>
import jax
import jax.numpy as jnp
import numpy as np
from jax.experimental import pallas as pl
from jax.experimental.pallas import tpu as pltpu


def _round_up(x, m):
    return ((x + m - 1) // m) * m


def _vmem_info():
    """(physical VMEM bytes per TensorCore, looks-like-v7x). Conservative fallback."""
    try:
        cap = int(pltpu.get_tpu_info().vmem_capacity_bytes)
        return cap, cap <= 64 * 1024 * 1024
    except Exception:                      # query unavailable -> conservative, no split
        return 64 * 1024 * 1024, False


def gru_kernel(lens_ref, gi_ref, w_hh_ref, b_hn_ref, out_ref, hfin_ref):
    """One grid step == one (batch tile, time chunk) of the GRU recurrence.

    lens_ref : (B_t, 1)            int32   valid lengths (0 for padded rows)
    gi_ref   : (TC, B_t, 3*H_pad)  float32 x@W_ih^T + b_ih (+ b_hh[r|z] folded)
    w_hh_ref : (H_pad, 3*H_pad)    bf16/f32 fused hidden weights (r|z|n)
    b_hn_ref : (1, H_pad)          float32 n-gate hidden bias (inside r*(...))
    out_ref  : (TC, B_t, H_pad)    float32 per-chunk output block
    hfin_ref : (1, B_t, H_pad)     float32 resident block == carried hidden
    """
    c = pl.program_id(1)                       # time-chunk index (inner, "arbitrary")
    tc = out_ref.shape[0]
    b_t = out_ref.shape[1]
    h_pad = out_ref.shape[-1]

    @pl.when(c == 0)
    def _():
        hfin_ref[...] = jnp.zeros_like(hfin_ref)

    # Hoisted, loop-invariant loads / broadcasts.
    lens = lens_ref[...]                                    # (B_t, 1) int32
    w_hh = w_hh_ref[...]                                    # (H_pad, 3*H_pad)
    b_hn = jnp.broadcast_to(b_hn_ref[...], (b_t, h_pad))    # broadcast once, not per step
    mxu_dtype = w_hh.dtype

    def step(s, h):
        t = c * tc + s                                      # global time step
        gi = gi_ref[s]                                      # (B_t, 3*H_pad), biases included
        gh = jnp.dot(h.astype(mxu_dtype), w_hh,
                     preferred_element_type=jnp.float32)    # one fused MXU push
        r = jax.nn.sigmoid(gi[:, :h_pad] + gh[:, :h_pad])
        z = jax.nn.sigmoid(gi[:, h_pad:2 * h_pad] + gh[:, h_pad:2 * h_pad])
        n = jnp.tanh(gi[:, 2 * h_pad:] + r * (gh[:, 2 * h_pad:] + b_hn))
        h_new = n + z * (h - n)                             # == (1-z)*n + z*h, 1 op fewer
        valid = t < lens                                    # (B_t, 1) bool
        out_ref[s] = jnp.where(valid, h_new, 0.0)           # zeros at padding
        return jnp.where(valid, h_new, h)                   # freeze hidden past src_len

    h0 = hfin_ref[0]
    unroll = True if tc <= 16 else 8                        # partial unroll on big chunks
    h_last = jax.lax.fori_loop(0, tc, step, h0, unroll=unroll)
    hfin_ref[0] = h_last


def encoder_rnn_forward(src_seqs, src_lens, emb_table, w_ih, w_hh, b_ih, b_hh,
                        *, time_chunk=64, recurrence_dtype=jnp.bfloat16,
                        batch_tiles=None):
    """Pallas EncoderRNN.forward (num_layers=1, unidirectional).

    src_seqs : (T, B) int32;  src_lens : (B,) int32, sorted desc, src_lens[0] == T
    emb_table: (V, E) f32
    w_ih (3H,E), w_hh (3H,H), b_ih/b_hh (3H,)  -- PyTorch GRU layout
    Returns (outputs (T,B,H), hidden (1,B,H)).
    """
    T, B = src_seqs.shape
    H = w_hh.shape[1]
    E = emb_table.shape[1]

    B_pad = _round_up(max(B, 8), 8)      # sublane tile
    H_pad = _round_up(H, 128)            # lane tile

    vmem_cap, is_v7x_like = _vmem_info()

    # v7x has 2 TensorCores; sequences are independent across batch -> shard batch.
    if batch_tiles is None:
        batch_tiles = 2 if (is_v7x_like and B_pad % 16 == 0) else 1
    B_tile = B_pad // batch_tiles

    # VMEM-aware time chunk: double-buffered gi + out chunks must stay well under
    # physical VMEM (64 MiB/TC on v7x, 128 MiB on v5e/v6e).
    bytes_per_step = 2 * B_tile * (3 * H_pad + H_pad) * 4      # double-buffered, f32
    tc_cap = max(1, int(0.45 * vmem_cap) // bytes_per_step)
    TC = max(1, min(time_chunk, T, tc_cap))
    T_pad = _round_up(T, TC)
    num_chunks = T_pad // TC

    # ---- Input projection, produced directly in the padded kernel layout ----
    # Padded tokens/rows are masked by `valid = t < lens` inside the kernel, so any
    # token id works for padding; no jnp.pad of the big gi tensor is ever needed.
    seqs_p = jnp.pad(src_seqs.astype(jnp.int32), ((0, T_pad - T), (0, B_pad - B)))
    emb = jnp.take(emb_table, seqs_p.reshape(-1), axis=0).astype(jnp.float32)

    w_ih_g = jnp.pad(w_ih.astype(jnp.float32).reshape(3, H, E),
                     ((0, 0), (0, H_pad - H), (0, 0)))             # (3, H_pad, E)
    w_ih_p = jnp.transpose(w_ih_g, (2, 0, 1)).reshape(E, 3 * H_pad)

    b_ih_g = jnp.pad(b_ih.astype(jnp.float32).reshape(3, H), ((0, 0), (0, H_pad - H)))
    b_hh_g = jnp.pad(b_hh.astype(jnp.float32).reshape(3, H), ((0, 0), (0, H_pad - H)))
    # Fold b_hh[r], b_hh[z] into the input-side bias (they are added before the
    # sigmoids); only the n-gate hidden bias must stay inside r*(gh_n + b_hn).
    gate_mask = jnp.array([1.0, 1.0, 0.0], jnp.float32)[:, None]
    b_in_fold = (b_ih_g + gate_mask * b_hh_g).reshape(1, 3 * H_pad)
    b_hn = b_hh_g[2:3]                                             # (1, H_pad)

    gi = (emb @ w_ih_p + b_in_fold).reshape(T_pad, B_pad, 3 * H_pad)

    # ---- Fused, padded hidden-side weights (bf16 for the MXU by default) ----
    w_hh_g = jnp.transpose(w_hh.astype(jnp.float32).reshape(3, H, H), (2, 0, 1))
    w_hh_g = jnp.pad(w_hh_g, ((0, H_pad - H), (0, 0), (0, H_pad - H)))
    w_hh_p = w_hh_g.reshape(H_pad, 3 * H_pad).astype(recurrence_dtype)

    # Padded batch rows get length 0 -> outputs stay zero, hidden stays zero.
    lens_p = jnp.pad(src_lens.astype(jnp.int32), (0, B_pad - B)).reshape(B_pad, 1)

    # Explicit scoped-VMEM limit (default is only 16/32 MiB, far below physical).
    gi_chunk = TC * B_tile * 3 * H_pad * 4
    out_chunk = TC * B_tile * H_pad * 4
    fixed = (H_pad * 3 * H_pad * jnp.dtype(recurrence_dtype).itemsize
             + H_pad * 4 + B_tile * 4 + B_tile * H_pad * 4)
    needed = 2 * (gi_chunk + out_chunk + fixed)
    vmem_limit = int(min(max(needed * 1.5, needed + (4 << 20)), 0.9 * vmem_cap))

    outputs_p, hidden_p = pl.pallas_call(
        gru_kernel,
        out_shape=(jax.ShapeDtypeStruct((T_pad, B_pad, H_pad), jnp.float32),
                   jax.ShapeDtypeStruct((1, B_pad, H_pad), jnp.float32)),
        grid_spec=pltpu.PrefetchScalarGridSpec(
            num_scalar_prefetch=0,
            grid=(batch_tiles, num_chunks),
            in_specs=[
                pl.BlockSpec((B_tile, 1), lambda b, c: (b, 0)),                # lens
                pl.BlockSpec((TC, B_tile, 3 * H_pad), lambda b, c: (c, b, 0)), # gi chunk
                pl.BlockSpec((H_pad, 3 * H_pad), lambda b, c: (0, 0)),         # fused W_hh
                pl.BlockSpec((1, H_pad), lambda b, c: (0, 0)),                 # n-gate bias
            ],
            out_specs=[
                pl.BlockSpec((TC, B_tile, H_pad), lambda b, c: (c, b, 0)),     # outputs
                pl.BlockSpec((1, B_tile, H_pad), lambda b, c: (0, b, 0)),      # final hidden
            ],
        ),
        compiler_params=pltpu.CompilerParams(
            dimension_semantics=("parallel", "arbitrary"),   # batch || ; time = recurrence
            vmem_limit_bytes=vmem_limit),
    )(lens_p, gi, w_hh_p, b_hn)

    outputs = outputs_p[:T, :B, :H]
    hidden = hidden_p[:, :B, :H]
    return outputs, hidden


def encoder_rnn_reference(src_seqs, src_lens, emb_table, w_ih, w_hh, b_ih, b_hh):
    """Pure-JAX reference (lax.scan) with identical packed-sequence semantics."""
    T, B = src_seqs.shape
    H = w_hh.shape[1]
    emb = jnp.take(emb_table, src_seqs, axis=0).astype(jnp.float32)

    def step(h, xt_t):
        x_t, t = xt_t
        gi = x_t @ w_ih.T + b_ih
        gh = h @ w_hh.T + b_hh
        i_r, i_z, i_n = gi[:, :H], gi[:, H:2 * H], gi[:, 2 * H:]
        h_r, h_z, h_n = gh[:, :H], gh[:, H:2 * H], gh[:, 2 * H:]
        r = jax.nn.sigmoid(i_r + h_r)
        z = jax.nn.sigmoid(i_z + h_z)
        n = jnp.tanh(i_n + r * h_n)
        h_new = (1.0 - z) * n + z * h
        valid = (t < src_lens)[:, None]
        h_next = jnp.where(valid, h_new, h)
        out = jnp.where(valid, h_new, 0.0)
        return h_next, out

    h0 = jnp.zeros((B, H), jnp.float32)
    h_fin, outs = jax.lax.scan(step, h0, (emb, jnp.arange(T)))
    return outs, h_fin[None]


if __name__ == "__main__":
    # Small shapes consistent with the module's forward signature.
    T, B, V, E, H = 8, 2, 50, 32, 32
    key = jax.random.PRNGKey(0)
    k0, k1, k2, k3, k4, k5 = jax.random.split(key, 6)

    src_seqs = jax.random.randint(k0, (T, B), 0, V, dtype=jnp.int32)
    src_lens = jnp.array([T, 5], dtype=jnp.int32)   # sorted descending, max == T

    # Deterministic parameter init (PyTorch GRU: U(-1/sqrt(H), 1/sqrt(H))).
    s = 1.0 / np.sqrt(H)
    emb_table = jax.random.normal(k1, (V, E), dtype=jnp.float32) * 0.1
    w_ih = jax.random.uniform(k2, (3 * H, E), jnp.float32, -s, s)
    w_hh = jax.random.uniform(k3, (3 * H, H), jnp.float32, -s, s)
    b_ih = jax.random.uniform(k4, (3 * H,), jnp.float32, -s, s)
    b_hh = jax.random.uniform(k5, (3 * H,), jnp.float32, -s, s)

    ref_out, ref_hid = encoder_rnn_reference(src_seqs, src_lens, emb_table,
                                             w_ih, w_hh, b_ih, b_hh)

    # Default (fast) mode: bf16 MXU recurrence -> looser tolerances.
    outputs, hidden = encoder_rnn_forward(src_seqs, src_lens, emb_table,
                                          w_ih, w_hh, b_ih, b_hh)
    jax.block_until_ready((outputs, hidden))
    assert outputs.shape == (T, B, H) and hidden.shape == (1, B, H)
    np.testing.assert_allclose(np.asarray(outputs), np.asarray(ref_out),
                               rtol=3e-2, atol=3e-3)
    np.testing.assert_allclose(np.asarray(hidden), np.asarray(ref_hid),
                               rtol=3e-2, atol=3e-3)

    # Exact-accuracy mode: f32 recurrence, tight tolerances.
    out32, hid32 = encoder_rnn_forward(src_seqs, src_lens, emb_table,
                                       w_ih, w_hh, b_ih, b_hh,
                                       recurrence_dtype=jnp.float32)
    jax.block_until_ready((out32, hid32))
    np.testing.assert_allclose(np.asarray(out32), np.asarray(ref_out),
                               rtol=1e-4, atol=1e-5)
    np.testing.assert_allclose(np.asarray(hid32), np.asarray(ref_hid),
                               rtol=1e-4, atol=1e-5)

    print("KERNEL_OK")
</pallas_src>

<mosaic_0001>
module attributes {stable_mosaic.version = 11 : i64} {
  func.func @gru_kernel(%arg0: i32, %arg1: i32, %arg2: memref<8x1xi32, #tpu.memory_space<vmem>>, %arg3: memref<8x8x384xf32, #tpu.memory_space<vmem>>, %arg4: memref<128x384xbf16, #tpu.memory_space<vmem>>, %arg5: memref<1x128xf32, #tpu.memory_space<vmem>>, %arg6: memref<8x8x128xf32, #tpu.memory_space<vmem>>, %arg7: memref<1x8x128xf32, #tpu.memory_space<vmem>>) attributes {dimension_semantics = [#tpu.dimension_semantics<parallel>, #tpu.dimension_semantics<arbitrary>], iteration_bounds = array<i64: 1, 1>, scalar_prefetch = 0 : i64, scratch_operands = 0 : i64, tpu.core_type = #tpu.core_type<tc>, window_params = [{transform_indices = @transform_0, window_bounds = array<i64: 8, 1>}, {transform_indices = @transform_1, window_bounds = array<i64: 8, 8, 384>}, {pipeline_mode = #tpu.pipeline_mode<synchronous>, transform_indices = @transform_2, window_bounds = array<i64: 128, 384>}, {pipeline_mode = #tpu.pipeline_mode<synchronous>, transform_indices = @transform_3, window_bounds = array<i64: 1, 128>}, {transform_indices = @transform_4, window_bounds = array<i64: 8, 8, 128>}, {transform_indices = @transform_5, window_bounds = array<i64: 1, 8, 128>}]} {
    %c0_i32 = arith.constant 0 : i32
    %0 = arith.cmpi eq, %arg1, %c0_i32 : i32
    %1 = arith.extui %0 : i1 to i32
    %c0_i32_0 = arith.constant 0 : i32
    %2 = arith.cmpi ne, %1, %c0_i32_0 : i32
    scf.if %2 {
      %cst_84 = arith.constant 0.000000e+00 : f32
      %373 = vector.broadcast %cst_84 : f32 to vector<1x8x128xf32>
      %c0_85 = arith.constant 0 : index
      %c0_86 = arith.constant 0 : index
      %c0_87 = arith.constant 0 : index
      %374 = vector.load %arg7[%c0_85, %c0_86, %c0_87] : memref<1x8x128xf32, #tpu.memory_space<vmem>>, vector<1x8x128xf32>
      tpu.vector_store %arg7[%c0_85, %c0_86, %c0_87], %373 {strides = array<i32>} : memref<1x8x128xf32, #tpu.memory_space<vmem>>, vector<1x8x128xf32>,
    } else {
    }
    %c0 = arith.constant 0 : index
    %c0_1 = arith.constant 0 : index
    %3 = vector.load %arg2[%c0, %c0_1] : memref<8x1xi32, #tpu.memory_space<vmem>>, vector<8x1xi32>
    %c0_2 = arith.constant 0 : index
    %c0_3 = arith.constant 0 : index
    %4 = vector.load %arg4[%c0_2, %c0_3] : memref<128x384xbf16, #tpu.memory_space<vmem>>, vector<128x384xbf16>
    %c0_4 = arith.constant 0 : index
    %c0_5 = arith.constant 0 : index
    %5 = vector.load %arg5[%c0_4, %c0_5] : memref<1x128xf32, #tpu.memory_space<vmem>>, vector<1x128xf32>
    %6 = vector.shape_cast %5 : vector<1x128xf32> to vector<1x128xf32>
    %7 = vector.broadcast %6 : vector<1x128xf32> to vector<8x128xf32>
    %c0_6 = arith.constant 0 : index
    %c0_7 = arith.constant 0 : index
    %c0_8 = arith.constant 0 : index
    %8 = vector.load %arg7[%c0_6, %c0_7, %c0_8] : memref<1x8x128xf32, #tpu.memory_space<vmem>>, vector<1x8x128xf32>
    %9 = vector.shape_cast %8 : vector<1x8x128xf32> to vector<8x128xf32>
    %c0_i32_9 = arith.constant 0 : i32
    %c8_i32 = arith.constant 8 : i32
    %10 = arith.muli %arg1, %c8_i32 : i32
    %11 = arith.addi %10, %c0_i32_9 : i32
    %12 = arith.index_cast %c0_i32_9 : i32 to index
    %c0_10 = arith.constant 0 : index
    %c0_11 = arith.constant 0 : index
    %13 = vector.load %arg3[%12, %c0_10, %c0_11] : memref<8x8x384xf32, #tpu.memory_space<vmem>>, vector<1x8x384xf32>
    %14 = vector.shape_cast %13 : vector<1x8x384xf32> to vector<8x384xf32>
    %15 = arith.truncf %9 : vector<8x128xf32> to vector<8x128xbf16>
    %cst = arith.constant dense<0.000000e+00> : vector<8x384xf32>
    %16 = tpu.matmul %15, %4, %cst {dimension_numbers = #tpu.dot_dimension_numbers<[1], [0], [0], [1], [0, 0, 1, 1], [], []>} : vector<8x128xbf16>, vector<128x384xbf16>, vector<8x384xf32> -> vector<8x384xf32>
    %17 = vector.extract_strided_slice %14 {offsets = [0, 0], sizes = [8, 128], strides = [1, 1]} : vector<8x384xf32> to vector<8x128xf32>
    %18 = vector.extract_strided_slice %16 {offsets = [0, 0], sizes = [8, 128], strides = [1, 1]} : vector<8x384xf32> to vector<8x128xf32>
    %19 = arith.addf %17, %18 : vector<8x128xf32>
    %20 = arith.negf %19 : vector<8x128xf32>
    %21 = math.exp %20 : vector<8x128xf32>
    %cst_12 = arith.constant 1.000000e+00 : f32
    %22 = vector.broadcast %cst_12 : f32 to vector<8x128xf32>
    %23 = arith.addf %22, %21 : vector<8x128xf32>
    %24 = arith.divf %22, %23 : vector<8x128xf32>
    %25 = vector.extract_strided_slice %14 {offsets = [0, 128], sizes = [8, 128], strides = [1, 1]} : vector<8x384xf32> to vector<8x128xf32>
    %26 = vector.extract_strided_slice %16 {offsets = [0, 128], sizes = [8, 128], strides = [1, 1]} : vector<8x384xf32> to vector<8x128xf32>
    %27 = arith.addf %25, %26 : vector<8x128xf32>
    %28 = arith.negf %27 : vector<8x128xf32>
    %29 = math.exp %28 : vector<8x128xf32>
    %cst_13 = arith.constant 1.000000e+00 : f32
    %30 = vector.broadcast %cst_13 : f32 to vector<8x128xf32>
    %31 = arith.addf %30, %29 : vector<8x128xf32>
    %32 = arith.divf %30, %31 : vector<8x128xf32>
    %33 = vector.extract_strided_slice %14 {offsets = [0, 256], sizes = [8, 128], strides = [1, 1]} : vector<8x384xf32> to vector<8x128xf32>
    %34 = vector.extract_strided_slice %16 {offsets = [0, 256], sizes = [8, 128], strides = [1, 1]} : vector<8x384xf32> to vector<8x128xf32>
    %35 = arith.addf %34, %7 : vector<8x128xf32>
    %36 = arith.mulf %24, %35 : vector<8x128xf32>
    %37 = arith.addf %33, %36 : vector<8x128xf32>
    %38 = math.tanh %37 : vector<8x128xf32>
    %39 = arith.subf %9, %38 : vector<8x128xf32>
    %40 = arith.mulf %32, %39 : vector<8x128xf32>
    %41 = arith.addf %38, %40 : vector<8x128xf32>
    %42 = vector.broadcast %11 : i32 to vector<8x1xi32>
    %43 = arith.cmpi slt, %42, %3 : vector<8x1xi32>
    %cst_14 = arith.constant 0.000000e+00 : f32
    %44 = vector.shape_cast %43 : vector<8x1xi1> to vector<8x1xi1>
    %45 = vector.broadcast %44 : vector<8x1xi1> to vector<8x128xi1>
    %46 = vector.broadcast %cst_14 : f32 to vector<8x128xf32>
    %47 = arith.select %45, %41, %46 : vector<8x128xi1>, vector<8x128xf32>
    %48 = arith.index_cast %c0_i32_9 : i32 to index
    %c0_15 = arith.constant 0 : index
    %c0_16 = arith.constant 0 : index
    %49 = vector.load %arg6[%48, %c0_15, %c0_16] : memref<8x8x128xf32, #tpu.memory_space<vmem>>, vector<1x8x128xf32>
    %50 = vector.shape_cast %49 : vector<1x8x128xf32> to vector<8x128xf32>
    %51 = vector.shape_cast %47 : vector<8x128xf32> to vector<1x8x128xf32>
    tpu.vector_store %arg6[%48, %c0_15, %c0_16], %51 {strides = array<i32>} : memref<8x8x128xf32, #tpu.memory_space<vmem>>, vector<1x8x128xf32>,
    %52 = vector.shape_cast %43 : vector<8x1xi1> to vector<8x1xi1>
    %53 = vector.broadcast %52 : vector<8x1xi1> to vector<8x128xi1>
    %54 = arith.select %53, %41, %9 : vector<8x128xi1>, vector<8x128xf32>
    %c1_i32 = arith.constant 1 : i32
    %c8_i32_17 = arith.constant 8 : i32
    %55 = arith.muli %arg1, %c8_i32_17 : i32
    %56 = arith.addi %55, %c1_i32 : i32
    %57 = arith.index_cast %c1_i32 : i32 to index
    %c0_18 = arith.constant 0 : index
    %c0_19 = arith.constant 0 : index
    %58 = vector.load %arg3[%57, %c0_18, %c0_19] : memref<8x8x384xf32, #tpu.memory_space<vmem>>, vector<1x8x384xf32>
    %59 = vector.shape_cast %58 : vector<1x8x384xf32> to vector<8x384xf32>
    %60 = arith.truncf %54 : vector<8x128xf32> to vector<8x128xbf16>
    %cst_20 = arith.constant dense<0.000000e+00> : vector<8x384xf32>
    %61 = tpu.matmul %60, %4, %cst_20 {dimension_numbers = #tpu.dot_dimension_numbers<[1], [0], [0], [1], [0, 0, 1, 1], [], []>} : vector<8x128xbf16>, vector<128x384xbf16>, vector<8x384xf32> -> vector<8x384xf32>
    %62 = vector.extract_strided_slice %59 {offsets = [0, 0], sizes = [8, 128], strides = [1, 1]} : vector<8x384xf32> to vector<8x128xf32>
    %63 = vector.extract_strided_slice %61 {offsets = [0, 0], sizes = [8, 128], strides = [1, 1]} : vector<8x384xf32> to vector<8x128xf32>
    %64 = arith.addf %62, %63 : vector<8x128xf32>
    %65 = arith.negf %64 : vector<8x128xf32>
    %66 = math.exp %65 : vector<8x128xf32>
    %cst_21 = arith.constant 1.000000e+00 : f32
    %67 = vector.broadcast %cst_21 : f32 to vector<8x128xf32>
    %68 = arith.addf %67, %66 : vector<8x128xf32>
    %69 = arith.divf %67, %68 : vector<8x128xf32>
    %70 = vector.extract_strided_slice %59 {offsets = [0, 128], sizes = [8, 128], strides = [1, 1]} : vector<8x384xf32> to vector<8x128xf32>
    %71 = vector.extract_strided_slice %61 {offsets = [0, 128], sizes = [8, 128], strides = [1, 1]} : vector<8x384xf32> to vector<8x128xf32>
    %72 = arith.addf %70, %71 : vector<8x128xf32>
    %73 = arith.negf %72 : vector<8x128xf32>
    %74 = math.exp %73 : vector<8x128xf32>
    %cst_22 = arith.constant 1.000000e+00 : f32
    %75 = vector.broadcast %cst_22 : f32 to vector<8x128xf32>
    %76 = arith.addf %75, %74 : vector<8x128xf32>
    %77 = arith.divf %75, %76 : vector<8x128xf32>
    %78 = vector.extract_strided_slice %59 {offsets = [0, 256], sizes = [8, 128], strides = [1, 1]} : vector<8x384xf32> to vector<8x128xf32>
    %79 = vector.extract_strided_slice %61 {offsets = [0, 256], sizes = [8, 128], strides = [1, 1]} : vector<8x384xf32> to vector<8x128xf32>
    %80 = arith.addf %79, %7 : vector<8x128xf32>
    %81 = arith.mulf %69, %80 : vector<8x128xf32>
    %82 = arith.addf %78, %81 : vector<8x128xf32>
    %83 = math.tanh %82 : vector<8x128xf32>
    %84 = arith.subf %54, %83 : vector<8x128xf32>
    %85 = arith.mulf %77, %84 : vector<8x128xf32>
    %86 = arith.addf %83, %85 : vector<8x128xf32>
    %87 = vector.broadcast %56 : i32 to vector<8x1xi32>
    %88 = arith.cmpi slt, %87, %3 : vector<8x1xi32>
    %cst_23 = arith.constant 0.000000e+00 : f32
    %89 = vector.shape_cast %88 : vector<8x1xi1> to vector<8x1xi1>
    %90 = vector.broadcast %89 : vector<8x1xi1> to vector<8x128xi1>
    %91 = vector.broadcast %cst_23 : f32 to vector<8x128xf32>
    %92 = arith.select %90, %86, %91 : vector<8x128xi1>, vector<8x128xf32>
    %93 = arith.index_cast %c1_i32 : i32 to index
    %c0_24 = arith.constant 0 : index
    %c0_25 = arith.constant 0 : index
    %94 = vector.load %arg6[%93, %c0_24, %c0_25] : memref<8x8x128xf32, #tpu.memory_space<vmem>>, vector<1x8x128xf32>
    %95 = vector.shape_cast %94 : vector<1x8x128xf32> to vector<8x128xf32>
    %96 = vector.shape_cast %92 : vector<8x128xf32> to vector<1x8x128xf32>
    tpu.vector_store %arg6[%93, %c0_24, %c0_25], %96 {strides = array<i32>} : memref<8x8x128xf32, #tpu.memory_space<vmem>>, vector<1x8x128xf32>,
    %97 = vector.shape_cast %88 : vector<8x1xi1> to vector<8x1xi1>
    %98 = vector.broadcast %97 : vector<8x1xi1> to vector<8x128xi1>
    %99 = arith.select %98, %86, %54 : vector<8x128xi1>, vector<8x128xf32>
    %c2_i32 = arith.constant 2 : i32
    %c8_i32_26 = arith.constant 8 : i32
    %100 = arith.muli %arg1, %c8_i32_26 : i32
    %101 = arith.addi %100, %c2_i32 : i32
    %102 = arith.index_cast %c2_i32 : i32 to index
    %c0_27 = arith.constant 0 : index
    %c0_28 = arith.constant 0 : index
    %103 = vector.load %arg3[%102, %c0_27, %c0_28] : memref<8x8x384xf32, #tpu.memory_space<vmem>>, vector<1x8x384xf32>
    %104 = vector.shape_cast %103 : vector<1x8x384xf32> to vector<8x384xf32>
    %105 = arith.truncf %99 : vector<8x128xf32> to vector<8x128xbf16>
    %cst_29 = arith.constant dense<0.000000e+00> : vector<8x384xf32>
    %106 = tpu.matmul %105, %4, %cst_29 {dimension_numbers = #tpu.dot_dimension_numbers<[1], [0], [0], [1], [0, 0, 1, 1], [], []>} : vector<8x128xbf16>, vector<128x384xbf16>, vector<8x384xf32> -> vector<8x384xf32>
    %107 = vector.extract_strided_slice %104 {offsets = [0, 0], sizes = [8, 128], strides = [1, 1]} : vector<8x384xf32> to vector<8x128xf32>
    %108 = vector.extract_strided_slice %106 {offsets = [0, 0], sizes = [8, 128], strides = [1, 1]} : vector<8x384xf32> to vector<8x128xf32>
    %109 = arith.addf %107, %108 : vector<8x128xf32>
    %110 = arith.negf %109 : vector<8x128xf32>
    %111 = math.exp %110 : vector<8x128xf32>
    %cst_30 = arith.constant 1.000000e+00 : f32
    %112 = vector.broadcast %cst_30 : f32 to vector<8x128xf32>
    %113 = arith.addf %112, %111 : vector<8x128xf32>
    %114 = arith.divf %112, %113 : vector<8x128xf32>
    %115 = vector.extract_strided_slice %104 {offsets = [0, 128], sizes = [8, 128], strides = [1, 1]} : vector<8x384xf32> to vector<8x128xf32>
    %116 = vector.extract_strided_slice %106 {offsets = [0, 128], sizes = [8, 128], strides = [1, 1]} : vector<8x384xf32> to vector<8x128xf32>
    %117 = arith.addf %115, %116 : vector<8x128xf32>
    %118 = arith.negf %117 : vector<8x128xf32>
    %119 = math.exp %118 : vector<8x128xf32>
    %cst_31 = arith.constant 1.000000e+00 : f32
    %120 = vector.broadcast %cst_31 : f32 to vector<8x128xf32>
    %121 = arith.addf %120, %119 : vector<8x128xf32>
    %122 = arith.divf %120, %121 : vector<8x128xf32>
    %123 = vector.extract_strided_slice %104 {offsets = [0, 256], sizes = [8, 128], strides = [1, 1]} : vector<8x384xf32> to vector<8x128xf32>
    %124 = vector.extract_strided_slice %106 {offsets = [0, 256], sizes = [8, 128], strides = [1, 1]} : vector<8x384xf32> to vector<8x128xf32>
    %125 = arith.addf %124, %7 : vector<8x128xf32>
    %126 = arith.mulf %114, %125 : vector<8x128xf32>
    %127 = arith.addf %123, %126 : vector<8x128xf32>
    %128 = math.tanh %127 : vector<8x128xf32>
    %129 = arith.subf %99, %128 : vector<8x128xf32>
    %130 = arith.mulf %122, %129 : vector<8x128xf32>
    %131 = arith.addf %128, %130 : vector<8x128xf32>
    %132 = vector.broadcast %101 : i32 to vector<8x1xi32>
    %133 = arith.cmpi slt, %132, %3 : vector<8x1xi32>
    %cst_32 = arith.constant 0.000000e+00 : f32
    %134 = vector.shape_cast %133 : vector<8x1xi1> to vector<8x1xi1>
    %135 = vector.broadcast %134 : vector<8x1xi1> to vector<8x128xi1>
    %136 = vector.broadcast %cst_32 : f32 to vector<8x128xf32>
    %137 = arith.select %135, %131, %136 : vector<8x128xi1>, vector<8x128xf32>
    %138 = arith.index_cast %c2_i32 : i32 to index
    %c0_33 = arith.constant 0 : index
    %c0_34 = arith.constant 0 : index
    %139 = vector.load %arg6[%138, %c0_33, %c0_34] : memref<8x8x128xf32, #tpu.memory_space<vmem>>, vector<1x8x128xf32>
    %140 = vector.shape_cast %139 : vector<1x8x128xf32> to vector<8x128xf32>
    %141 = vector.shape_cast %137 : vector<8x128xf32> to vector<1x8x128xf32>
    tpu.vector_store %arg6[%138, %c0_33, %c0_34], %141 {strides = array<i32>} : memref<8x8x128xf32, #tpu.memory_space<vmem>>, vector<1x8x128xf32>,
    %142 = vector.shape_cast %133 : vector<8x1xi1> to vector<8x1xi1>
    %143 = vector.broadcast %142 : vector<8x1xi1> to vector<8x128xi1>
    %144 = arith.select %143, %131, %99 : vector<8x128xi1>, vector<8x128xf32>
    %c3_i32 = arith.constant 3 : i32
    %c8_i32_35 = arith.constant 8 : i32
    %145 = arith.muli %arg1, %c8_i32_35 : i32
    %146 = arith.addi %145, %c3_i32 : i32
    %147 = arith.index_cast %c3_i32 : i32 to index
    %c0_36 = arith.constant 0 : index
    %c0_37 = arith.constant 0 : index
    %148 = vector.load %arg3[%147, %c0_36, %c0_37] : memref<8x8x384xf32, #tpu.memory_space<vmem>>, vector<1x8x384xf32>
    %149 = vector.shape_cast %148 : vector<1x8x384xf32> to vector<8x384xf32>
    %150 = arith.truncf %144 : vector<8x128xf32> to vector<8x128xbf16>
    %cst_38 = arith.constant dense<0.000000e+00> : vector<8x384xf32>
    %151 = tpu.matmul %150, %4, %cst_38 {dimension_numbers = #tpu.dot_dimension_numbers<[1], [0], [0], [1], [0, 0, 1, 1], [], []>} : vector<8x128xbf16>, vector<128x384xbf16>, vector<8x384xf32> -> vector<8x384xf32>
    %152 = vector.extract_strided_slice %149 {offsets = [0, 0], sizes = [8, 128], strides = [1, 1]} : vector<8x384xf32> to vector<8x128xf32>
    %153 = vector.extract_strided_slice %151 {offsets = [0, 0], sizes = [8, 128], strides = [1, 1]} : vector<8x384xf32> to vector<8x128xf32>
    %154 = arith.addf %152, %153 : vector<8x128xf32>
    %155 = arith.negf %154 : vector<8x128xf32>
    %156 = math.exp %155 : vector<8x128xf32>
    %cst_39 = arith.constant 1.000000e+00 : f32
    %157 = vector.broadcast %cst_39 : f32 to vector<8x128xf32>
    %158 = arith.addf %157, %156 : vector<8x128xf32>
    %159 = arith.divf %157, %158 : vector<8x128xf32>
    %160 = vector.extract_strided_slice %149 {offsets = [0, 128], sizes = [8, 128], strides = [1, 1]} : vector<8x384xf32> to vector<8x128xf32>
    %161 = vector.extract_strided_slice %151 {offsets = [0, 128], sizes = [8, 128], strides = [1, 1]} : vector<8x384xf32> to vector<8x128xf32>
    %162 = arith.addf %160, %161 : vector<8x128xf32>
    %163 = arith.negf %162 : vector<8x128xf32>
    %164 = math.exp %163 : vector<8x128xf32>
    %cst_40 = arith.constant 1.000000e+00 : f32
    %165 = vector.broadcast %cst_40 : f32 to vector<8x128xf32>
    %166 = arith.addf %165, %164 : vector<8x128xf32>
    %167 = arith.divf %165, %166 : vector<8x128xf32>
    %168 = vector.extract_strided_slice %149 {offsets = [0, 256], sizes = [8, 128], strides = [1, 1]} : vector<8x384xf32> to vector<8x128xf32>
    %169 = vector.extract_strided_slice %151 {offsets = [0, 256], sizes = [8, 128], strides = [1, 1]} : vector<8x384xf32> to vector<8x128xf32>
    %170 = arith.addf %169, %7 : vector<8x128xf32>
    %171 = arith.mulf %159, %170 : vector<8x128xf32>
    %172 = arith.addf %168, %171 : vector<8x128xf32>
    %173 = math.tanh %172 : vector<8x128xf32>
    %174 = arith.subf %144, %173 : vector<8x128xf32>
    %175 = arith.mulf %167, %174 : vector<8x128xf32>
    %176 = arith.addf %173, %175 : vector<8x128xf32>
    %177 = vector.broadcast %146 : i32 to vector<8x1xi32>
    %178 = arith.cmpi slt, %177, %3 : vector<8x1xi32>
    %cst_41 = arith.constant 0.000000e+00 : f32
    %179 = vector.shape_cast %178 : vector<8x1xi1> to vector<8x1xi1>
    %180 = vector.broadcast %179 : vector<8x1xi1> to vector<8x128xi1>
    %181 = vector.broadcast %cst_41 : f32 to vector<8x128xf32>
    %182 = arith.select %180, %176, %181 : vector<8x128xi1>, vector<8x128xf32>
    %183 = arith.index_cast %c3_i32 : i32 to index
    %c0_42 = arith.constant 0 : index
    %c0_43 = arith.constant 0 : index
    %184 = vector.load %arg6[%183, %c0_42, %c0_43] : memref<8x8x128xf32, #tpu.memory_space<vmem>>, vector<1x8x128xf32>
    %185 = vector.shape_cast %184 : vector<1x8x128xf32> to vector<8x128xf32>
    %186 = vector.shape_cast %182 : vector<8x128xf32> to vector<1x8x128xf32>
    tpu.vector_store %arg6[%183, %c0_42, %c0_43], %186 {strides = array<i32>} : memref<8x8x128xf32, #tpu.memory_space<vmem>>, vector<1x8x128xf32>,
    %187 = vector.shape_cast %178 : vector<8x1xi1> to vector<8x1xi1>
    %188 = vector.broadcast %187 : vector<8x1xi1> to vector<8x128xi1>
    %189 = arith.select %188, %176, %144 : vector<8x128xi1>, vector<8x128xf32>
    %c4_i32 = arith.constant 4 : i32
    %c8_i32_44 = arith.constant 8 : i32
    %190 = arith.muli %arg1, %c8_i32_44 : i32
    %191 = arith.addi %190, %c4_i32 : i32
    %192 = arith.index_cast %c4_i32 : i32 to index
    %c0_45 = arith.constant 0 : index
    %c0_46 = arith.constant 0 : index
    %193 = vector.load %arg3[%192, %c0_45, %c0_46] : memref<8x8x384xf32, #tpu.memory_space<vmem>>, vector<1x8x384xf32>
    %194 = vector.shape_cast %193 : vector<1x8x384xf32> to vector<8x384xf32>
    %195 = arith.truncf %189 : vector<8x128xf32> to vector<8x128xbf16>
    %cst_47 = arith.constant dense<0.000000e+00> : vector<8x384xf32>
    %196 = tpu.matmul %195, %4, %cst_47 {dimension_numbers = #tpu.dot_dimension_numbers<[1], [0], [0], [1], [0, 0, 1, 1], [], []>} : vector<8x128xbf16>, vector<128x384xbf16>, vector<8x384xf32> -> vector<8x384xf32>
    %197 = vector.extract_strided_slice %194 {offsets = [0, 0], sizes = [8, 128], strides = [1, 1]} : vector<8x384xf32> to vector<8x128xf32>
    %198 = vector.extract_strided_slice %196 {offsets = [0, 0], sizes = [8, 128], strides = [1, 1]} : vector<8x384xf32> to vector<8x128xf32>
    %199 = arith.addf %197, %198 : vector<8x128xf32>
    %200 = arith.negf %199 : vector<8x128xf32>
    %201 = math.exp %200 : vector<8x128xf32>
    %cst_48 = arith.constant 1.000000e+00 : f32
    %202 = vector.broadcast %cst_48 : f32 to vector<8x128xf32>
    %203 = arith.addf %202, %201 : vector<8x128xf32>
    %204 = arith.divf %202, %203 : vector<8x128xf32>
    %205 = vector.extract_strided_slice %194 {offsets = [0, 128], sizes = [8, 128], strides = [1, 1]} : vector<8x384xf32> to vector<8x128xf32>
    %206 = vector.extract_strided_slice %196 {offsets = [0, 128], sizes = [8, 128], strides = [1, 1]} : vector<8x384xf32> to vector<8x128xf32>
    %207 = arith.addf %205, %206 : vector<8x128xf32>
    %208 = arith.negf %207 : vector<8x128xf32>
    %209 = math.exp %208 : vector<8x128xf32>
    %cst_49 = arith.constant 1.000000e+00 : f32
    %210 = vector.broadcast %cst_49 : f32 to vector<8x128xf32>
    %211 = arith.addf %210, %209 : vector<8x128xf32>
    %212 = arith.divf %210, %211 : vector<8x128xf32>
    %213 = vector.extract_strided_slice %194 {offsets = [0, 256], sizes = [8, 128], strides = [1, 1]} : vector<8x384xf32> to vector<8x128xf32>
    %214 = vector.extract_strided_slice %196 {offsets = [0, 256], sizes = [8, 128], strides = [1, 1]} : vector<8x384xf32> to vector<8x128xf32>
    %215 = arith.addf %214, %7 : vector<8x128xf32>
    %216 = arith.mulf %204, %215 : vector<8x128xf32>
    %217 = arith.addf %213, %216 : vector<8x128xf32>
    %218 = math.tanh %217 : vector<8x128xf32>
    %219 = arith.subf %189, %218 : vector<8x128xf32>
    %220 = arith.mulf %212, %219 : vector<8x128xf32>
    %221 = arith.addf %218, %220 : vector<8x128xf32>
    %222 = vector.broadcast %191 : i32 to vector<8x1xi32>
    %223 = arith.cmpi slt, %222, %3 : vector<8x1xi32>
    %cst_50 = arith.constant 0.000000e+00 : f32
    %224 = vector.shape_cast %223 : vector<8x1xi1> to vector<8x1xi1>
    %225 = vector.broadcast %224 : vector<8x1xi1> to vector<8x128xi1>
    %226 = vector.broadcast %cst_50 : f32 to vector<8x128xf32>
    %227 = arith.select %225, %221, %226 : vector<8x128xi1>, vector<8x128xf32>
    %228 = arith.index_cast %c4_i32 : i32 to index
    %c0_51 = arith.constant 0 : index
    %c0_52 = arith.constant 0 : index
    %229 = vector.load %arg6[%228, %c0_51, %c0_52] : memref<8x8x128xf32, #tpu.memory_space<vmem>>, vector<1x8x128xf32>
    %230 = vector.shape_cast %229 : vector<1x8x128xf32> to vector<8x128xf32>
    %231 = vector.shape_cast %227 : vector<8x128xf32> to vector<1x8x128xf32>
    tpu.vector_store %arg6[%228, %c0_51, %c0_52], %231 {strides = array<i32>} : memref<8x8x128xf32, #tpu.memory_space<vmem>>, vector<1x8x128xf32>,
    %232 = vector.shape_cast %223 : vector<8x1xi1> to vector<8x1xi1>
    %233 = vector.broadcast %232 : vector<8x1xi1> to vector<8x128xi1>
    %234 = arith.select %233, %221, %189 : vector<8x128xi1>, vector<8x128xf32>
    %c5_i32 = arith.constant 5 : i32
    %c8_i32_53 = arith.constant 8 : i32
    %235 = arith.muli %arg1, %c8_i32_53 : i32
    %236 = arith.addi %235, %c5_i32 : i32
    %237 = arith.index_cast %c5_i32 : i32 to index
    %c0_54 = arith.constant 0 : index
    %c0_55 = arith.constant 0 : index
    %238 = vector.load %arg3[%237, %c0_54, %c0_55] : memref<8x8x384xf32, #tpu.memory_space<vmem>>, vector<1x8x384xf32>
    %239 = vector.shape_cast %238 : vector<1x8x384xf32> to vector<8x384xf32>
    %240 = arith.truncf %234 : vector<8x128xf32> to vector<8x128xbf16>
    %cst_56 = arith.constant dense<0.000000e+00> : vector<8x384xf32>
    %241 = tpu.matmul %240, %4, %cst_56 {dimension_numbers = #tpu.dot_dimension_numbers<[1], [0], [0], [1], [0, 0, 1, 1], [], []>} : vector<8x128xbf16>, vector<128x384xbf16>, vector<8x384xf32> -> vector<8x384xf32>
    %242 = vector.extract_strided_slice %239 {offsets = [0, 0], sizes = [8, 128], strides = [1, 1]} : vector<8x384xf32> to vector<8x128xf32>
    %243 = vector.extract_strided_slice %241 {offsets = [0, 0], sizes = [8, 128], strides = [1, 1]} : vector<8x384xf32> to vector<8x128xf32>
    %244 = arith.addf %242, %243 : vector<8x128xf32>
    %245 = arith.negf %244 : vector<8x128xf32>
    %246 = math.exp %245 : vector<8x128xf32>
    %cst_57 = arith.constant 1.000000e+00 : f32
    %247 = vector.broadcast %cst_57 : f32 to vector<8x128xf32>
    %248 = arith.addf %247, %246 : vector<8x128xf32>
    %249 = arith.divf %247, %248 : vector<8x128xf32>
    %250 = vector.extract_strided_slice %239 {offsets = [0, 128], sizes = [8, 128], strides = [1, 1]} : vector<8x384xf32> to vector<8x128xf32>
    %251 = vector.extract_strided_slice %241 {offsets = [0, 128], sizes = [8, 128], strides = [1, 1]} : vector<8x384xf32> to vector<8x128xf32>
    %252 = arith.addf %250, %251 : vector<8x128xf32>
    %253 = arith.negf %252 : vector<8x128xf32>
    %254 = math.exp %253 : vector<8x128xf32>
    %cst_58 = arith.constant 1.000000e+00 : f32
    %255 = vector.broadcast %cst_58 : f32 to vector<8x128xf32>
    %256 = arith.addf %255, %254 : vector<8x128xf32>
    %257 = arith.divf %255, %256 : vector<8x128xf32>
    %258 = vector.extract_strided_slice %239 {offsets = [0, 256], sizes = [8, 128], strides = [1, 1]} : vector<8x384xf32> to vector<8x128xf32>
    %259 = vector.extract_strided_slice %241 {offsets = [0, 256], sizes = [8, 128], strides = [1, 1]} : vector<8x384xf32> to vector<8x128xf32>
    %260 = arith.addf %259, %7 : vector<8x128xf32>
    %261 = arith.mulf %249, %260 : vector<8x128xf32>
    %262 = arith.addf %258, %261 : vector<8x128xf32>
    %263 = math.tanh %262 : vector<8x128xf32>
    %264 = arith.subf %234, %263 : vector<8x128xf32>
    %265 = arith.mulf %257, %264 : vector<8x128xf32>
    %266 = arith.addf %263, %265 : vector<8x128xf32>
    %267 = vector.broadcast %236 : i32 to vector<8x1xi32>
    %268 = arith.cmpi slt, %267, %3 : vector<8x1xi32>
    %cst_59 = arith.constant 0.000000e+00 : f32
    %269 = vector.shape_cast %268 : vector<8x1xi1> to vector<8x1xi1>
    %270 = vector.broadcast %269 : vector<8x1xi1> to vector<8x128xi1>
    %271 = vector.broadcast %cst_59 : f32 to vector<8x128xf32>
    %272 = arith.select %270, %266, %271 : vector<8x128xi1>, vector<8x128xf32>
    %273 = arith.index_cast %c5_i32 : i32 to index
    %c0_60 = arith.constant 0 : index
    %c0_61 = arith.constant 0 : index
    %274 = vector.load %arg6[%273, %c0_60, %c0_61] : memref<8x8x128xf32, #tpu.memory_space<vmem>>, vector<1x8x128xf32>
    %275 = vector.shape_cast %274 : vector<1x8x128xf32> to vector<8x128xf32>
    %276 = vector.shape_cast %272 : vector<8x128xf32> to vector<1x8x128xf32>
    tpu.vector_store %arg6[%273, %c0_60, %c0_61], %276 {strides = array<i32>} : memref<8x8x128xf32, #tpu.memory_space<vmem>>, vector<1x8x128xf32>,
    %277 = vector.shape_cast %268 : vector<8x1xi1> to vector<8x1xi1>
    %278 = vector.broadcast %277 : vector<8x1xi1> to vector<8x128xi1>
    %279 = arith.select %278, %266, %234 : vector<8x128xi1>, vector<8x128xf32>
    %c6_i32 = arith.constant 6 : i32
    %c8_i32_62 = arith.constant 8 : i32
    %280 = arith.muli %arg1, %c8_i32_62 : i32
    %281 = arith.addi %280, %c6_i32 : i32
    %282 = arith.index_cast %c6_i32 : i32 to index
    %c0_63 = arith.constant 0 : index
    %c0_64 = arith.constant 0 : index
    %283 = vector.load %arg3[%282, %c0_63, %c0_64] : memref<8x8x384xf32, #tpu.memory_space<vmem>>, vector<1x8x384xf32>
    %284 = vector.shape_cast %283 : vector<1x8x384xf32> to vector<8x384xf32>
    %285 = arith.truncf %279 : vector<8x128xf32> to vector<8x128xbf16>
    %cst_65 = arith.constant dense<0.000000e+00> : vector<8x384xf32>
    %286 = tpu.matmul %285, %4, %cst_65 {dimension_numbers = #tpu.dot_dimension_numbers<[1], [0], [0], [1], [0, 0, 1, 1], [], []>} : vector<8x128xbf16>, vector<128x384xbf16>, vector<8x384xf32> -> vector<8x384xf32>
    %287 = vector.extract_strided_slice %284 {offsets = [0, 0], sizes = [8, 128], strides = [1, 1]} : vector<8x384xf32> to vector<8x128xf32>
    %288 = vector.extract_strided_slice %286 {offsets = [0, 0], sizes = [8, 128], strides = [1, 1]} : vector<8x384xf32> to vector<8x128xf32>
    %289 = arith.addf %287, %288 : vector<8x128xf32>
    %290 = arith.negf %289 : vector<8x128xf32>
    %291 = math.exp %290 : vector<8x128xf32>
    %cst_66 = arith.constant 1.000000e+00 : f32
    %292 = vector.broadcast %cst_66 : f32 to vector<8x128xf32>
    %293 = arith.addf %292, %291 : vector<8x128xf32>
    %294 = arith.divf %292, %293 : vector<8x128xf32>
    %295 = vector.extract_strided_slice %284 {offsets = [0, 128], sizes = [8, 128], strides = [1, 1]} : vector<8x384xf32> to vector<8x128xf32>
    %296 = vector.extract_strided_slice %286 {offsets = [0, 128], sizes = [8, 128], strides = [1, 1]} : vector<8x384xf32> to vector<8x128xf32>
    %297 = arith.addf %295, %296 : vector<8x128xf32>
    %298 = arith.negf %297 : vector<8x128xf32>
    %299 = math.exp %298 : vector<8x128xf32>
    %cst_67 = arith.constant 1.000000e+00 : f32
    %300 = vector.broadcast %cst_67 : f32 to vector<8x128xf32>
    %301 = arith.addf %300, %299 : vector<8x128xf32>
    %302 = arith.divf %300, %301 : vector<8x128xf32>
    %303 = vector.extract_strided_slice %284 {offsets = [0, 256], sizes = [8, 128], strides = [1, 1]} : vector<8x384xf32> to vector<8x128xf32>
    %304 = vector.extract_strided_slice %286 {offsets = [0, 256], sizes = [8, 128], strides = [1, 1]} : vector<8x384xf32> to vector<8x128xf32>
    %305 = arith.addf %304, %7 : vector<8x128xf32>
    %306 = arith.mulf %294, %305 : vector<8x128xf32>
    %307 = arith.addf %303, %306 : vector<8x128xf32>
    %308 = math.tanh %307 : vector<8x128xf32>
    %309 = arith.subf %279, %308 : vector<8x128xf32>
    %310 = arith.mulf %302, %309 : vector<8x128xf32>
    %311 = arith.addf %308, %310 : vector<8x128xf32>
    %312 = vector.broadcast %281 : i32 to vector<8x1xi32>
    %313 = arith.cmpi slt, %312, %3 : vector<8x1xi32>
    %cst_68 = arith.constant 0.000000e+00 : f32
    %314 = vector.shape_cast %313 : vector<8x1xi1> to vector<8x1xi1>
    %315 = vector.broadcast %314 : vector<8x1xi1> to vector<8x128xi1>
    %316 = vector.broadcast %cst_68 : f32 to vector<8x128xf32>
    %317 = arith.select %315, %311, %316 : vector<8x128xi1>, vector<8x128xf32>
    %318 = arith.index_cast %c6_i32 : i32 to index
    %c0_69 = arith.constant 0 : index
    %c0_70 = arith.constant 0 : index
    %319 = vector.load %arg6[%318, %c0_69, %c0_70] : memref<8x8x128xf32, #tpu.memory_space<vmem>>, vector<1x8x128xf32>
    %320 = vector.shape_cast %319 : vector<1x8x128xf32> to vector<8x128xf32>
    %321 = vector.shape_cast %317 : vector<8x128xf32> to vector<1x8x128xf32>
    tpu.vector_store %arg6[%318, %c0_69, %c0_70], %321 {strides = array<i32>} : memref<8x8x128xf32, #tpu.memory_space<vmem>>, vector<1x8x128xf32>,
    %322 = vector.shape_cast %313 : vector<8x1xi1> to vector<8x1xi1>
    %323 = vector.broadcast %322 : vector<8x1xi1> to vector<8x128xi1>
    %324 = arith.select %323, %311, %279 : vector<8x128xi1>, vector<8x128xf32>
    %c7_i32 = arith.constant 7 : i32
    %c8_i32_71 = arith.constant 8 : i32
    %325 = arith.muli %arg1, %c8_i32_71 : i32
    %326 = arith.addi %325, %c7_i32 : i32
    %327 = arith.index_cast %c7_i32 : i32 to index
    %c0_72 = arith.constant 0 : index
    %c0_73 = arith.constant 0 : index
    %328 = vector.load %arg3[%327, %c0_72, %c0_73] : memref<8x8x384xf32, #tpu.memory_space<vmem>>, vector<1x8x384xf32>
    %329 = vector.shape_cast %328 : vector<1x8x384xf32> to vector<8x384xf32>
    %330 = arith.truncf %324 : vector<8x128xf32> to vector<8x128xbf16>
    %cst_74 = arith.constant dense<0.000000e+00> : vector<8x384xf32>
    %331 = tpu.matmul %330, %4, %cst_74 {dimension_numbers = #tpu.dot_dimension_numbers<[1], [0], [0], [1], [0, 0, 1, 1], [], []>} : vector<8x128xbf16>, vector<128x384xbf16>, vector<8x384xf32> -> vector<8x384xf32>
    %332 = vector.extract_strided_slice %329 {offsets = [0, 0], sizes = [8, 128], strides = [1, 1]} : vector<8x384xf32> to vector<8x128xf32>
    %333 = vector.extract_strided_slice %331 {offsets = [0, 0], sizes = [8, 128], strides = [1, 1]} : vector<8x384xf32> to vector<8x128xf32>
    %334 = arith.addf %332, %333 : vector<8x128xf32>
    %335 = arith.negf %334 : vector<8x128xf32>
    %336 = math.exp %335 : vector<8x128xf32>
    %cst_75 = arith.constant 1.000000e+00 : f32
    %337 = vector.broadcast %cst_75 : f32 to vector<8x128xf32>
    %338 = arith.addf %337, %336 : vector<8x128xf32>
    %339 = arith.divf %337, %338 : vector<8x128xf32>
    %340 = vector.extract_strided_slice %329 {offsets = [0, 128], sizes = [8, 128], strides = [1, 1]} : vector<8x384xf32> to vector<8x128xf32>
    %341 = vector.extract_strided_slice %331 {offsets = [0, 128], sizes = [8, 128], strides = [1, 1]} : vector<8x384xf32> to vector<8x128xf32>
    %342 = arith.addf %340, %341 : vector<8x128xf32>
    %343 = arith.negf %342 : vector<8x128xf32>
    %344 = math.exp %343 : vector<8x128xf32>
    %cst_76 = arith.constant 1.000000e+00 : f32
    %345 = vector.broadcast %cst_76 : f32 to vector<8x128xf32>
    %346 = arith.addf %345, %344 : vector<8x128xf32>
    %347 = arith.divf %345, %346 : vector<8x128xf32>
    %348 = vector.extract_strided_slice %329 {offsets = [0, 256], sizes = [8, 128], strides = [1, 1]} : vector<8x384xf32> to vector<8x128xf32>
    %349 = vector.extract_strided_slice %331 {offsets = [0, 256], sizes = [8, 128], strides = [1, 1]} : vector<8x384xf32> to vector<8x128xf32>
    %350 = arith.addf %349, %7 : vector<8x128xf32>
    %351 = arith.mulf %339, %350 : vector<8x128xf32>
    %352 = arith.addf %348, %351 : vector<8x128xf32>
    %353 = math.tanh %352 : vector<8x128xf32>
    %354 = arith.subf %324, %353 : vector<8x128xf32>
    %355 = arith.mulf %347, %354 : vector<8x128xf32>
    %356 = arith.addf %353, %355 : vector<8x128xf32>
    %357 = vector.broadcast %326 : i32 to vector<8x1xi32>
    %358 = arith.cmpi slt, %357, %3 : vector<8x1xi32>
    %cst_77 = arith.constant 0.000000e+00 : f32
    %359 = vector.shape_cast %358 : vector<8x1xi1> to vector<8x1xi1>
    %360 = vector.broadcast %359 : vector<8x1xi1> to vector<8x128xi1>
    %361 = vector.broadcast %cst_77 : f32 to vector<8x128xf32>
    %362 = arith.select %360, %356, %361 : vector<8x128xi1>, vector<8x128xf32>
    %363 = arith.index_cast %c7_i32 : i32 to index
    %c0_78 = arith.constant 0 : index
    %c0_79 = arith.constant 0 : index
    %364 = vector.load %arg6[%363, %c0_78, %c0_79] : memref<8x8x128xf32, #tpu.memory_space<vmem>>, vector<1x8x128xf32>
    %365 = vector.shape_cast %364 : vector<1x8x128xf32> to vector<8x128xf32>
    %366 = vector.shape_cast %362 : vector<8x128xf32> to vector<1x8x128xf32>
    tpu.vector_store %arg6[%363, %c0_78, %c0_79], %366 {strides = array<i32>} : memref<8x8x128xf32, #tpu.memory_space<vmem>>, vector<1x8x128xf32>,
    %367 = vector.shape_cast %358 : vector<8x1xi1> to vector<8x1xi1>
    %368 = vector.broadcast %367 : vector<8x1xi1> to vector<8x128xi1>
    %369 = arith.select %368, %356, %324 : vector<8x128xi1>, vector<8x128xf32>
    %c8_i32_80 = arith.constant 8 : i32
    %c0_81 = arith.constant 0 : index
    %c0_82 = arith.constant 0 : index
    %c0_83 = arith.constant 0 : index
    %370 = vector.load %arg7[%c0_81, %c0_82, %c0_83] : memref<1x8x128xf32, #tpu.memory_space<vmem>>, vector<1x8x128xf32>
    %371 = vector.shape_cast %370 : vector<1x8x128xf32> to vector<8x128xf32>
    %372 = vector.shape_cast %369 : vector<8x128xf32> to vector<1x8x128xf32>
    tpu.vector_store %arg7[%c0_81, %c0_82, %c0_83], %372 {strides = array<i32>} : memref<1x8x128xf32, #tpu.memory_space<vmem>>, vector<1x8x128xf32>,
    return
  }
  func.func @transform_0(%arg0: i32, %arg1: i32) -> (i32, i32) {
    %c0_i32 = arith.constant 0 : i32
    %c0_i32_0 = arith.constant 0 : i32
    return %arg0, %c0_i32 : i32, i32
  }
  func.func @transform_1(%arg0: i32, %arg1: i32) -> (i32, i32, i32) {
    %c0_i32 = arith.constant 0 : i32
    %c0_i32_0 = arith.constant 0 : i32
    return %arg1, %arg0, %c0_i32 : i32, i32, i32
  }
  func.func @transform_2(%arg0: i32, %arg1: i32) -> (i32, i32) {
    %c0_i32 = arith.constant 0 : i32
    %c0_i32_0 = arith.constant 0 : i32
    %c0_i32_1 = arith.constant 0 : i32
    return %c0_i32, %c0_i32_0 : i32, i32
  }
  func.func @transform_3(%arg0: i32, %arg1: i32) -> (i32, i32) {
    %c0_i32 = arith.constant 0 : i32
    %c0_i32_0 = arith.constant 0 : i32
    %c0_i32_1 = arith.constant 0 : i32
    return %c0_i32, %c0_i32_0 : i32, i32
  }
  func.func @transform_4(%arg0: i32, %arg1: i32) -> (i32, i32, i32) {
    %c0_i32 = arith.constant 0 : i32
    %c0_i32_0 = arith.constant 0 : i32
    return %arg1, %arg0, %c0_i32 : i32, i32, i32
  }
  func.func @transform_5(%arg0: i32, %arg1: i32) -> (i32, i32, i32) {
    %c0_i32 = arith.constant 0 : i32
    %c0_i32_0 = arith.constant 0 : i32
    %c0_i32_1 = arith.constant 0 : i32
    return %c0_i32, %arg0, %c0_i32_0 : i32, i32, i32
  }
}

</mosaic_0001>

<bundles_post_ra>
// kernel: tpu_custom_call.1
= control target key start
LH: loop header
LB: loop body
LE: loop exit
PB: predicated region body
PF: predicated region fallthrough
CT: control target
= control target key end

     0   :  { %11 = vsyncpa [#allocation3], 0  ;;  %s1814_s0 = inlined_call_operand.vmem [shape: s32[8,1], index: 0, kind: input, shape index: {}]   ;;  %s1815_s1 = inlined_call_operand.hbm [shape: f32[8,8,384], index: 1, kind: input, shape index: {}]   ;;  %s1816_s2 = inlined_call_operand.hbm [shape: bf16[128,384], index: 2, kind: input, shape index: {}]   ;;  %s1817_s3 = inlined_call_operand.vmem [shape: f32[1,128], index: 3, kind: input, shape index: {}]   ;;  %s1818_s4 = inlined_call_operand.hbm [shape: f32[8,8,128], index: 4, kind: output, shape index: {0}]   ;;  %s1819_s5 = inlined_call_operand.hbm [shape: f32[1,8,128], index: 5, kind: output, shape index: {1}]  }
   0x1   :  { %12 = vsyncpa [#allocation6], 0 }
   0x2   :  { %13 = vsyncpa [#allocation4], 0 }
   0x3   :  { %14 = vsyncpa [#allocation9], 0  ;;  %s21_s20 = sshll.u32 %s1815_s1, 4  ;;  %s1437_s21 = smov [#allocation2]   ;;  %s22_s20 = int_to_ptr.hbm [resolvable:$true] %s21_s20 }
   0x4   :  { %s23_s22 = sshll.u32 %s1437_s21, 4  ;;  %s34_s25 = sshll.u32 %s1816_s2, 4  ;;  %s24_s22 = int_to_ptr.vmem [resolvable:$true] %s23_s22  ;;  %s35_s25 = int_to_ptr.hbm [resolvable:$true] %s34_s25 }
   0x5   :  { %s1438_s26 = smov 384   ;;  %s1439_s27 = smov 24  }
   0x6   :  { %29 = dma.hbm_to_vmem [thread:$0]  %s22_s20, 3072, %s24_s22, [#allocation3], %s1438_s26, %s1438_s26, %s1439_s27  }
   0x7   :  { %s1440_s28 = smov [#allocation5]   ;;  %s1441_s30 = smov 192  }
   0x8   :  { %s36_s29 = sshll.u32 %s1440_s28, 4  ;;  %s1442_s6 = smov 12   ;;  %s37_s29 = int_to_ptr.vmem [resolvable:$true] %s36_s29 }
   0x9   :  { %42 = dma.hbm_to_vmem [thread:$0]  %s35_s25, 3072, %s37_s29, [#allocation6], %s1441_s30, %s1441_s30, %s1442_s6  }
   0xa   :  { %1429 = dma.done.wait [#allocation3], 3072  }
   0xb   :  { %1430 = vsyncadd [#allocation3], 4294964224 }
   0xc   :  { %1431 = dma.done.wait [#allocation6], 3072  }
   0xd   :  { %1432 = vsyncadd [#allocation6], 4294964224  ;;  %v1169_v0 = vld [vmem:[#allocation5 + $0xa8] sm:$0xf]  ;;  %v1225_v1 = vld [vmem:[#allocation5 + $0xb0] sm:$0xf0] }
   0xe   :  { %v1224_v2 = vld [vmem:[#allocation5 + $0xac] sm:$0xf]  ;;  %v1485_v3 = vor.u32 %v1225_v1, %v1169_v0  ;;  %v1171_v4 = vld [vmem:[#allocation5 + $0xb4] sm:$0xf0]  ;;  %v1157_v5 = vld [vmem:[#allocation5 + $0x90] sm:$0xf] }
   0xf   :  { %v1222_v6 = vld [vmem:[#allocation5 + $0x98] sm:$0xf0]  ;;  %v1487_v7 = vor.u32 %v1224_v2, %v1171_v4  ;;  %v1221_v8 = vld [vmem:[#allocation5 + $0x94] sm:$0xf]  ;;  %v1159_v9 = vld [vmem:[#allocation5 + $0x9c] sm:$0xf0] }
  0x10   :  { %229 = vmatpush.bf16.msra.mxu0 %v1485_v3  ;;  %v1490_v10 = vor.u32 %v1222_v6, %v1157_v5  ;;  %331 = vmatpush.bf16.msra.mxu3 %v1485_v3  ;;  %v1494_v11 = vor.u32 %v1221_v8, %v1159_v9  ;;  %v1145_v12 = vld [vmem:[#allocation5 + $0x78] sm:$0xf]  ;;  %v1219_v13 = vld [vmem:[#allocation5 + $0x80] sm:$0xf0]  ;;  %v1218_v14 = vld [vmem:[#allocation5 + $0x7c] sm:$0xf] }
  0x11   :  { %242 = vmatpush.bf16.msra.mxu1 %v1487_v7  ;;  %v1147_v15 = vld [vmem:[#allocation5 + $0x84] sm:$0xf0]  ;;  %v1177_v16 = vld [vmem:[#allocation5 + $0xb0] sm:$0xf]  ;;  %v1226_v17 = vld [vmem:[#allocation5 + $0xb8] sm:$0xf0]  ;;  %v1499_v19 = vor.u32 %v1219_v13, %v1145_v12 }
  0x12   :  { %v1496_v18 = vor.u32 %v1226_v17, %v1177_v16  ;;  %v1165_v20 = vld [vmem:[#allocation5 + $0x98] sm:$0xf]  ;;  %v1223_v21 = vld [vmem:[#allocation5 + $0xa0] sm:$0xf0]  ;;  %v1503_v22 = vor.u32 %v1218_v14, %v1147_v15  ;;  %v1133_v23 = vld [vmem:[#allocation5 + $0x60] sm:$0xf] }
  0x13   :  { %v1216_v24 = vld [vmem:[#allocation5 + $0x68] sm:$0xf0]  ;;  %v1215_v25 = vld [vmem:[#allocation5 + $0x64] sm:$0xf]  ;;  %v1506_v26 = vor.u32 %v1223_v21, %v1165_v20  ;;  %v1135_v27 = vld [vmem:[#allocation5 + $0x6c] sm:$0xf0] }
  0x14   :  { %230 = vmatpush.bf16.msra.mxu0 %v1490_v10  ;;  %332 = vmatpush.bf16.msra.mxu3 %v1490_v10  ;;  %v1153_v28 = vld [vmem:[#allocation5 + $0x80] sm:$0xf]  ;;  %v1220_v29 = vld [vmem:[#allocation5 + $0x88] sm:$0xf0]  ;;  %v1509_v30 = vor.u32 %v1216_v24, %v1133_v23  ;;  %v1513_v31 = vor.u32 %v1215_v25, %v1135_v27  ;;  %v1121_v32 = vld [vmem:[#allocation5 + $0x48] sm:$0xf] }
  0x15   :  { %243 = vmatpush.bf16.msra.mxu1 %v1494_v11  ;;  %255 = vmatpush.bf16.msra.mxu2 %v1496_v18  ;;  %v1213_v33 = vld [vmem:[#allocation5 + $0x50] sm:$0xf0]  ;;  %v1212_v34 = vld [vmem:[#allocation5 + $0x4c] sm:$0xf]  ;;  %v1516_v35 = vor.u32 %v1220_v29, %v1153_v28  ;;  %v1123_v36 = vld [vmem:[#allocation5 + $0x54] sm:$0xf0] }
  0x16   :  { %v1141_v37 = vld [vmem:[#allocation5 + $0x68] sm:$0xf]  ;;  %v1217_v38 = vld [vmem:[#allocation5 + $0x70] sm:$0xf0]  ;;  %v1519_v39 = vor.u32 %v1213_v33, %v1121_v32  ;;  %v1109_v40 = vld [vmem:[#allocation5 + $0x30] sm:$0xf]  ;;  %v1523_v44 = vor.u32 %v1212_v34, %v1123_v36 }
  0x17   :  { %v1210_v41 = vld [vmem:[#allocation5 + $0x38] sm:$0xf0]  ;;  %v1209_v42 = vld [vmem:[#allocation5 + $0x34] sm:$0xf]  ;;  %v1443_v43 = vmov 0   ;;  %v1526_v46 = vor.u32 %v1217_v38, %v1141_v37  ;;  %v1531_v48 = vld [vmem:[%s1814_s0] sm:$0xff] }
  0x18   :  { %231 = vmatpush.bf16.msra.mxu0 %v1499_v19  ;;  %333 = vmatpush.bf16.msra.mxu3 %v1499_v19  ;;  %v1111_v45 = vld [vmem:[#allocation5 + $0x3c] sm:$0xf0]  ;;  %v1129_v47 = vld [vmem:[#allocation5 + $0x50] sm:$0xf]  ;;  %v1214_v49 = vld [vmem:[#allocation5 + $0x58] sm:$0xf0]  ;;  %v1539_v51 = vor.u32 %v1210_v41, %v1109_v40 }
  0x19   :  { %244 = vmatpush.bf16.msra.mxu1 %v1503_v22  ;;  %256 = vmatpush.bf16.msra.mxu2 %v1506_v26  ;;  %vm1181_vm0 = vcmp.gt.s32.totalorder %v1531_v48, 0  ;;  %v1097_v52 = vld [vmem:[#allocation5 + $0x18] sm:$0xf]  ;;  %v1542_v53 = vor.u32 %v1209_v42, %v1111_v45  ;;  %v1207_v54 = vld [vmem:[#allocation5 + $0x20] sm:$0xf0]  ;;  %v1545_v57 = vor.u32 %v1214_v49, %v1129_v47  ;;  %vm1184_vm1 = vcmp.gt.s32.totalorder %v1531_v48, 1 }
  0x1a   :  { %1239 = vset.pattern.permute.xlu0 %v1443_v43  ;;  %1240 = vset.pattern.permute.xlu1 %v1443_v43  ;;  %v317_v50 = vsel %vm1181_vm0, 1, %v1443_v43  ;;  %v1206_v55 = vld [vmem:[#allocation5 + $0x1c] sm:$0xf]  ;;  %v1099_v56 = vld [vmem:[#allocation5 + $0x24] sm:$0xf0]  ;;  %v1550_v60 = vor.u32 %v1207_v54, %v1097_v52  ;;  %v419_v2 = vsel %vm1184_vm1, 1, %v1443_v43 }
  0x1b   :  { %1241 = vset.pattern.permute.xlu2 %v1443_v43  ;;  %319 = vperm.xlu0 %1239, %v317_v50   ;;  %v1117_v58 = vld [vmem:[#allocation5 + $0x38] sm:$0xf]  ;;  %v1211_v59 = vld [vmem:[#allocation5 + $0x40] sm:$0xf0]  ;;  %v1085_v61 = vld [vmem:[#allocation5] sm:$0xf]  ;;  %v1553_v62 = vor.u32 %v1206_v55, %v1099_v56 }
  0x1c   :  { %232 = vmatpush.bf16.msra.mxu0 %v1509_v30  ;;  %334 = vmatpush.bf16.msra.mxu3 %v1509_v30  ;;  %v1204_v63 = vld [vmem:[#allocation5 + $0x8] sm:$0xf0]  ;;  %v1203_v0 = vld [vmem:[#allocation5 + $0x4] sm:$0xf]  ;;  %v1556_v1 = vor.u32 %v1211_v59, %v1117_v58  ;;  %v1087_v4 = vld [vmem:[#allocation5 + $0xc] sm:$0xf0] }
  0x1d   :  { %245 = vmatpush.bf16.msra.mxu1 %v1513_v31  ;;  %257 = vmatpush.bf16.msra.mxu2 %v1516_v35  ;;  %v1105_v5 = vld [vmem:[#allocation5 + $0x20] sm:$0xf]  ;;  %v1208_v6 = vld [vmem:[#allocation5 + $0x28] sm:$0xf0]  ;;  %v1561_v8 = vor.u32 %v1204_v63, %v1085_v61  ;;  %v1564_v9 = vor.u32 %v1203_v0, %v1087_v4  ;;  %v1093_v13 = vld [vmem:[#allocation5 + $0x8] sm:$0xf] }
  0x1e   :  { %v1567_v12 = vor.u32 %v1208_v6, %v1105_v5  ;;  %v1205_v14 = vld [vmem:[#allocation5 + $0x10] sm:$0xf0]  ;;  %vm1199_vm2 = vcmp.gt.s32.totalorder %v1531_v48, 6  ;;  %v1444_v17 = vmov 0.0|0.0   ;;  %v97_v20 = vld [vmem:[#allocation2] sm:$0xff]  ;;  %v98_v21 = vld [vmem:[#allocation2 + $0x8] sm:$0xff] }
  0x1f   :  { %v1574_v15 = vor.u32 %v1205_v14, %v1093_v13  ;;  %v934_v16 = vsel %vm1199_vm2, 1, %v1443_v43  ;;  %v1638_v49 = vld [vmem:[%s1817_s3] ss:$0 sm:$0xff]  ;;  %vm1187_vm13 = vcmp.gt.s32.totalorder %v1531_v48, 2  ;;  %vm1190_vm14 = vcmp.gt.s32.totalorder %v1531_v48, 3  ;;  %s1053_s13 = sshll.u32 %s1818_s4, 4  ;;  %s1054_s13 = int_to_ptr.hbm [resolvable:$true] %s1053_s13 }
  0x20   :  { %233 = vmatpush.bf16.msra.mxu0 %v1519_v39  ;;  %335 = vmatpush.bf16.msra.mxu3 %v1519_v39  ;;  %s1446_s14 = smov [#allocation8]   ;;  %s1067_s18 = sshll.u32 %s1819_s5, 4  ;;  %s1068_s18 = int_to_ptr.hbm [resolvable:$true] %s1067_s18 }
  0x21   :  { %246 = vmatpush.bf16.msra.mxu1 %v1523_v44  ;;  %258 = vmatpush.bf16.msra.mxu2 %v1526_v46  ;;  %s1065_s15 = sshll.u32 %s1446_s14, 4  ;;  %s1447_s19 = smov 128   ;;  %s1066_s15 = int_to_ptr.vmem [resolvable:$true] %s1065_s15 }
  0x22   :  { %s1448_s4 = smov 8  }
  0x23   :  { %421 = vperm.xlu0 %1239, %v419_v2   ;;  %v99_v2 = vld [vmem:[#allocation2 + $0x10] sm:$0xff] }
  0x24   :  { %234 = vmatpush.bf16.msra.mxu0 %v1539_v51  ;;  %336 = vmatpush.bf16.msra.mxu3 %v1539_v51 }
  0x25   :  { %247 = vmatpush.bf16.msra.mxu1 %v1542_v53  ;;  %259 = vmatpush.bf16.msra.mxu2 %v1545_v57 }
  0x28   :  { %235 = vmatpush.bf16.msra.mxu0 %v1550_v60  ;;  %337 = vmatpush.bf16.msra.mxu3 %v1550_v60 }
  0x29   :  { %248 = vmatpush.bf16.msra.mxu1 %v1553_v62  ;;  %260 = vmatpush.bf16.msra.mxu2 %v1556_v1 }
  0x2b   :  { %936 = vperm.xlu0 %1239, %v934_v16  }
  0x2c   :  { %236 = vmatpush.bf16.msra.mxu0 %v1561_v8  ;;  %338 = vmatpush.bf16.msra.mxu3 %v1561_v8 }
  0x2d   :  { %249 = vmatpush.bf16.msra.mxu1 %v1564_v9  ;;  %261 = vmatpush.bf16.msra.mxu2 %v1567_v12 }
  0x2f   :  { %237 = vmatmul.bf16.vlgmr.msra.gmra.mxu0 %v1444_v17 }
  0x30   :  { %344 = vmatpush.bf16.msrb.mxu0 %v1487_v7  ;;  %250 = vmatmul.bf16.vlgmr.msra.gmra.mxu1 %v1444_v17 }
  0x31   :  { %357 = vmatpush.bf16.msrb.mxu1 %v1496_v18  ;;  %262 = vmatpush.bf16.msra.mxu2 %v1574_v15 }
  0x32   :  { %447 = vmatpush.bf16.msrb.mxu3 %v1487_v7 }
  0x34   :  { %345 = vmatpush.bf16.msrb.mxu0 %v1494_v11  ;;  %263 = vmatmul.bf16.vlgmr.msra.gmra.mxu2 %v1444_v17 }
  0x35   :  { %358 = vmatpush.bf16.msrb.mxu1 %v1506_v26  ;;  %434 = vmatpush.bf16.msrb.mxu2 %v1485_v3 }
  0x36   :  { %448 = vmatpush.bf16.msrb.mxu3 %v1494_v11 }
  0x38   :  { %346 = vmatpush.bf16.msrb.mxu0 %v1503_v22 }
  0x39   :  { %359 = vmatpush.bf16.msrb.mxu1 %v1516_v35  ;;  %435 = vmatpush.bf16.msrb.mxu2 %v1490_v10 }
  0x3a   :  { %449 = vmatpush.bf16.msrb.mxu3 %v1503_v22 }
  0x3c   :  { %347 = vmatpush.bf16.msrb.mxu0 %v1513_v31 }
  0x3d   :  { %360 = vmatpush.bf16.msrb.mxu1 %v1526_v46  ;;  %436 = vmatpush.bf16.msrb.mxu2 %v1499_v19 }
  0x3e   :  { %450 = vmatpush.bf16.msrb.mxu3 %v1513_v31 }
  0x40   :  { %348 = vmatpush.bf16.msrb.mxu0 %v1523_v44 }
  0x41   :  { %361 = vmatpush.bf16.msrb.mxu1 %v1545_v57  ;;  %437 = vmatpush.bf16.msrb.mxu2 %v1509_v30 }
  0x42   :  { %451 = vmatpush.bf16.msrb.mxu3 %v1523_v44 }
  0x44   :  { %349 = vmatpush.bf16.msrb.mxu0 %v1542_v53 }
  0x45   :  { %362 = vmatpush.bf16.msrb.mxu1 %v1556_v1  ;;  %438 = vmatpush.bf16.msrb.mxu2 %v1519_v39 }
  0x46   :  { %452 = vmatpush.bf16.msrb.mxu3 %v1542_v53 }
  0x48   :  { %350 = vmatpush.bf16.msrb.mxu0 %v1553_v62 }
  0x49   :  { %363 = vmatpush.bf16.msrb.mxu1 %v1567_v12  ;;  %439 = vmatpush.bf16.msrb.mxu2 %v1539_v51 }
  0x4a   :  { %453 = vmatpush.bf16.msrb.mxu3 %v1553_v62 }
  0x4c   :  { %351 = vmatpush.bf16.msrb.mxu0 %v1564_v9 }
  0x4d   :  { %364 = vmatpush.bf16.msrb.mxu1 %v1574_v15  ;;  %440 = vmatpush.bf16.msrb.mxu2 %v1550_v60 }
  0x4e   :  { %454 = vmatpush.bf16.msrb.mxu3 %v1564_v9 }
  0x50   :  { %460 = vmatpush.bf16.msra.mxu0 %v1496_v18 }
  0x51   :  { %537 = vmatpush.bf16.msra.mxu1 %v1485_v3  ;;  %441 = vmatpush.bf16.msrb.mxu2 %v1561_v8 }
  0x54   :  { %461 = vmatpush.bf16.msra.mxu0 %v1506_v26 }
  0x55   :  { %550 = vmatpush.bf16.msra.mxu2 %v1487_v7  ;;  %538 = vmatpush.bf16.msra.mxu1 %v1490_v10 }
  0x58   :  { %462 = vmatpush.bf16.msra.mxu0 %v1516_v35 }
  0x59   :  { %551 = vmatpush.bf16.msra.mxu2 %v1494_v11  ;;  %539 = vmatpush.bf16.msra.mxu1 %v1499_v19 }
  0x5c   :  { %463 = vmatpush.bf16.msra.mxu0 %v1526_v46 }
  0x5d   :  { %552 = vmatpush.bf16.msra.mxu2 %v1503_v22  ;;  %540 = vmatpush.bf16.msra.mxu1 %v1509_v30 }
  0x60   :  { %464 = vmatpush.bf16.msra.mxu0 %v1545_v57 }
  0x61   :  { %553 = vmatpush.bf16.msra.mxu2 %v1513_v31  ;;  %541 = vmatpush.bf16.msra.mxu1 %v1519_v39 }
  0x64   :  { %465 = vmatpush.bf16.msra.mxu0 %v1556_v1 }
  0x65   :  { %554 = vmatpush.bf16.msra.mxu2 %v1523_v44  ;;  %542 = vmatpush.bf16.msra.mxu1 %v1539_v51 }
  0x68   :  { %466 = vmatpush.bf16.msra.mxu0 %v1567_v12 }
  0x69   :  { %555 = vmatpush.bf16.msra.mxu2 %v1542_v53  ;;  %543 = vmatpush.bf16.msra.mxu1 %v1550_v60 }
  0x6c   :  { %467 = vmatpush.bf16.msra.mxu0 %v1574_v15 }
  0x6d   :  { %556 = vmatpush.bf16.msra.mxu2 %v1553_v62  ;;  %544 = vmatpush.bf16.msra.mxu1 %v1561_v8 }
  0x71   :  { %557 = vmatpush.bf16.msra.mxu2 %v1564_v9 }
  0xac   :  { %v238_v23 = vpop.f32.mrf.mxu0 }
  0xad   :  { %v268_v24 = vadd.f32 %v238_v23, %v97_v20  ;;  %v251_v25 = vpop.f32.mrf.mxu1 }
  0xae   :  { %v288_v27 = vadd.f32 %v251_v25, %v98_v21 }
  0xaf   :  { %v1179_v28 = vmul.f32 -1.442695, %v268_v24 }
  0xb0   :  { %v1180_v29 = vmul.f32 -1.442695, %v288_v27  ;;  %v320_v27 = vpop.permute.xlu0 %319 }
  0xb1   :  { %1243 = vpow2.f32 %v1179_v28  ;;  %vm321_vm11 = vcmp.eq.s32.totalorder %v320_v27, 1  ;;  %v329_v27 = vld [vmem:[#allocation2 + $0x28] sm:$0xff] }
  0xb2   :  { %1245 = vpow2.f32 %v1180_v29  ;;  %vm1324_vm12 = vmpackc.low %vm321_vm11, %vm321_vm11 }
  0xb4   :  { %v240_v32 = vpop.f32.mrf.mxu0 }
  0xb5   :  { %v253_v33 = vpop.f32.mrf.mxu1 }
  0xb7   :  { %v1244_v34 = vpop.eup %1243  ;;  %v264_v36 = vpop.f32.mrf.mxu2 }
  0xb8   :  { %v1246_v37 = vpop.eup %1245  ;;  %v272_v38 = vadd.f32 1.0, %v1244_v34  ;;  %v308_v59 = vadd.f32 %v1638_v49, %v264_v36  ;;  %v328_v34 = vld [vmem:[#allocation2 + $0x20] sm:$0xff] }
  0xb9   :  { %v292_v40 = vadd.f32 1.0, %v1246_v37 }
  0xba   :  { %1247 = vrcp.f32 %v272_v38  ;;  %v284_v54 = vand.u32 2147483648, %v272_v38  ;;  %v282_v56 = vand.u32 2147483647, %v272_v38  ;;  %vm278_vm4 = vweird.f32 %v272_v38 }
  0xbb   :  { %1249 = vrcp.f32 %v292_v40  ;;  %vm298_vm7 = vweird.f32 %v292_v40  ;;  %v304_v14 = vand.u32 2147483648, %v292_v40  ;;  %v302_v17 = vand.u32 2147483647, %v292_v40 }
  0xbc   :  { %v285_v63 = vor.u32 1.1754944e-38, %v284_v54  ;;  %vm283_vm6 = vcmp.eq.f32.partialorder %v282_v56, 8.507059e+37 }
  0xbd   :  { %v305_v20 = vor.u32 1.1754944e-38, %v304_v14  ;;  %vm303_vm10 = vcmp.eq.f32.partialorder %v302_v17, 8.507059e+37  ;;  %v625_v17 = vsel %vm1190_vm14, 1, %v1443_v43 }
  0xbf   :  { %v266_v41 = vpop.f32.mrf.mxu2 }
  0xc0   :  { %v1248_v42 = vpop.eup %1247  ;;  %v327_v41 = vld [vmem:[#allocation2 + $0x18] sm:$0xff] }
  0xc1   :  { %v1250_v45 = vpop.eup %1249  ;;  %v274_v47 = vmul.f32 %v1248_v42, %v272_v38  ;;  %vm279_vm3 = vweird.f32 %v1248_v42 }
  0xc2   :  { %v294_v52 = vmul.f32 %v1250_v45, %v292_v40  ;;  %vm280_vm5 = vmor %vm278_vm4, %vm279_vm3  ;;  %vm299_vm8 = vweird.f32 %v1250_v45  ;;  %vm1202_vm3 = vcmp.gt.s32.totalorder %v1531_v48, 7 }
  0xc3   :  { %v275_v50 = vsub.f32 1.0, %v274_v47  ;;  %vm300_vm9 = vmor %vm298_vm7, %vm299_vm8 }
  0xc4   :  { %v295_v61 = vsub.f32 1.0, %v294_v52 }
  0xc5   :  { %v276_v55 = vmul.f32 %v1248_v42, %v275_v50 }
  0xc6   :  { %v296_v6 = vmul.f32 %v1250_v45, %v295_v61 }
  0xc7   :  { %v277_v58 = vadd.f32 %v1248_v42, %v276_v55 }
  0xc8   :  { %v297_v16 = vadd.f32 %v1250_v45, %v296_v6 }
  0xc9   :  { %v281_v0 = vsel %vm280_vm5, %v1248_v42, %v277_v58 }
  0xca   :  { %v286_v4 = vsel %vm283_vm6, %v285_v63, %v281_v0  ;;  %v301_v21 = vsel %vm300_vm9, %v1250_v45, %v297_v16 }
  0xcb   :  { %v309_v5 = vmul.f32 %v308_v59, %v286_v4  ;;  %v306_v25 = vsel %vm303_vm10, %v305_v20, %v301_v21 }
  0xcd   :  { %v310_v13 = vadd.f32 %v309_v5, %v99_v2  ;;  %v522_v2 = vsel %vm1187_vm13, 1, %v1443_v43 }
  0xce   :  { %524 = vperm.xlu1 %1240, %v522_v2  }
  0xcf   :  { %1251 = vtanh.f32 %v310_v13 }
  0xd5   :  { %v1252_v23 = vpop.eup %1251 }
  0xd6   :  { %v312_v24 = vsub.f32 0.0, %v1252_v23  ;;  %627 = vperm.xlu1 %1240, %v625_v17  }
  0xd8   :  { %v313_v28 = vmul.f32 %v312_v24, %v306_v25 }
  0xda   :  { %v314_v29 = vadd.f32 %v1252_v23, %v313_v28 }
  0xdc   :  { %v1641_v32 = vsel %vm321_vm11, %v314_v29, 0.0  ;;  %v1325_v33 = vpack.c.bf16 %v314_v29, %v314_v29 }
  0xdd   :  { %323 = vst [vmem:[#allocation7] sm:$0xff] %v1641_v32 }
  0xde   :  { %1326 = vmatmul.msk.bf16.vlgmr.msra.gmra.mxu3 %vm1324_vm12, %v1325_v33  ;;  %1329 = vmatmul.msk.bf16.vlgmr.msrb.gmra.mxu0 %vm1324_vm12, %v1325_v33 }
  0xdf   :  { %1332 = vmatmul.msk.bf16.vlgmr.msrb.gmra.mxu1 %vm1324_vm12, %v1325_v33  ;;  %563 = vmatpush.bf16.msra.mxu3 %v1496_v18 }
  0xe0   :  { %640 = vmatpush.bf16.msrb.mxu0 %v1485_v3  ;;  %653 = vmatpush.bf16.msrb.mxu1 %v1487_v7 }
  0xe3   :  { %564 = vmatpush.bf16.msra.mxu3 %v1506_v26 }
  0xe4   :  { %641 = vmatpush.bf16.msrb.mxu0 %v1490_v10  ;;  %654 = vmatpush.bf16.msrb.mxu1 %v1494_v11 }
  0xe7   :  { %565 = vmatpush.bf16.msra.mxu3 %v1516_v35 }
  0xe8   :  { %642 = vmatpush.bf16.msrb.mxu0 %v1499_v19  ;;  %655 = vmatpush.bf16.msrb.mxu1 %v1503_v22 }
  0xeb   :  { %566 = vmatpush.bf16.msra.mxu3 %v1526_v46 }
  0xec   :  { %643 = vmatpush.bf16.msrb.mxu0 %v1509_v30  ;;  %656 = vmatpush.bf16.msrb.mxu1 %v1513_v31 }
  0xef   :  { %567 = vmatpush.bf16.msra.mxu3 %v1545_v57 }
  0xf0   :  { %644 = vmatpush.bf16.msrb.mxu0 %v1519_v39  ;;  %657 = vmatpush.bf16.msrb.mxu1 %v1523_v44 }
  0xf3   :  { %568 = vmatpush.bf16.msra.mxu3 %v1556_v1 }
  0xf4   :  { %645 = vmatpush.bf16.msrb.mxu0 %v1539_v51  ;;  %658 = vmatpush.bf16.msrb.mxu1 %v1542_v53 }
  0xf7   :  { %569 = vmatpush.bf16.msra.mxu3 %v1567_v12 }
  0xf8   :  { %646 = vmatpush.bf16.msrb.mxu0 %v1550_v60  ;;  %659 = vmatpush.bf16.msrb.mxu1 %v1553_v62 }
  0xfb   :  { %570 = vmatpush.bf16.msra.mxu3 %v1574_v15 }
  0xfc   :  { %647 = vmatpush.bf16.msrb.mxu0 %v1561_v8  ;;  %660 = vmatpush.bf16.msrb.mxu1 %v1564_v9 }
 0x15b   :  { %v353_v36 = vpop.f32.mrf.mxu0 }
 0x15c   :  { %v390_v37 = vadd.f32 %v353_v36, %v328_v34  ;;  %v366_v38 = vpop.f32.mrf.mxu1  ;;  %v1037_v34 = vsel %vm1202_vm3, 1, %v1443_v43 }
 0x15d   :  { %v410_v23 = vadd.f32 %v1638_v49, %v366_v38  ;;  %1039 = vperm.xlu1 %1240, %v1037_v34  }
 0x15e   :  { %v1183_v40 = vmul.f32 -1.442695, %v390_v37 }
 0x160   :  { %1253 = vpow2.f32 %v1183_v40 }
 0x161   :  { %v340_v42 = vpop.f32.mrf.mxu3 }
 0x162   :  { %v370_v45 = vadd.f32 %v340_v42, %v327_v41 }
 0x163   :  { %v355_v47 = vpop.f32.mrf.mxu0 }
 0x164   :  { %v1182_v50 = vmul.f32 -1.442695, %v370_v45  ;;  %v368_v52 = vpop.f32.mrf.mxu1 }
 0x165   :  { %v422_v52 = vpop.permute.xlu0 %421 }
 0x166   :  { %1255 = vpow2.f32 %v1182_v50  ;;  %v1254_v54 = vpop.eup %1253  ;;  %vm423_vm8 = vcmp.eq.s32.totalorder %v422_v52, 1 }
 0x167   :  { %v394_v58 = vadd.f32 1.0, %v1254_v54 }
 0x169   :  { %v342_v55 = vpop.f32.mrf.mxu3  ;;  %v406_v37 = vand.u32 2147483648, %v394_v58  ;;  %vm400_vm5 = vweird.f32 %v394_v58  ;;  %v404_v40 = vand.u32 2147483647, %v394_v58 }
 0x16b   :  { %v407_v42 = vor.u32 1.1754944e-38, %v406_v37  ;;  %vm405_vm7 = vcmp.eq.f32.partialorder %v404_v40, 8.507059e+37 }
 0x16c   :  { %v1256_v56 = vpop.eup %1255 }
 0x16d   :  { %v374_v59 = vadd.f32 1.0, %v1256_v56 }
 0x16f   :  { %1257 = vrcp.f32 %v374_v59  ;;  %v386_v6 = vand.u32 2147483648, %v374_v59  ;;  %v384_v14 = vand.u32 2147483647, %v374_v59  ;;  %vm380_vm0 = vweird.f32 %v374_v59 }
 0x170   :  { %1259 = vrcp.f32 %v394_v58 }
 0x171   :  { %v387_v21 = vor.u32 1.1754944e-38, %v386_v6  ;;  %vm385_vm2 = vcmp.eq.f32.partialorder %v384_v14, 8.507059e+37 }
 0x175   :  { %v1258_v61 = vpop.eup %1257 }
 0x176   :  { %v1260_v63 = vpop.eup %1259  ;;  %v376_v0 = vmul.f32 %v1258_v61, %v374_v59  ;;  %vm381_vm15 = vweird.f32 %v1258_v61  ;;  %v430_v59 = vld [vmem:[#allocation2 + $0x30] sm:$0xff] }
 0x177   :  { %v396_v5 = vmul.f32 %v1260_v63, %v394_v58  ;;  %vm382_vm1 = vmor %vm380_vm0, %vm381_vm15  ;;  %vm401_vm4 = vweird.f32 %v1260_v63 }
 0x178   :  { %v377_v4 = vsub.f32 1.0, %v376_v0  ;;  %vm402_vm6 = vmor %vm400_vm5, %vm401_vm4  ;;  %vm1196_vm4 = vcmp.gt.s32.totalorder %v1531_v48, 5 }
 0x179   :  { %v397_v20 = vsub.f32 1.0, %v396_v5 }
 0x17a   :  { %v378_v13 = vmul.f32 %v1258_v61, %v377_v4 }
 0x17b   :  { %v398_v29 = vmul.f32 %v1260_v63, %v397_v20 }
 0x17c   :  { %v379_v16 = vadd.f32 %v1258_v61, %v378_v13 }
 0x17d   :  { %v399_v36 = vadd.f32 %v1260_v63, %v398_v29 }
 0x17e   :  { %v383_v24 = vsel %vm382_vm1, %v1258_v61, %v379_v16  ;;  %v431_v61 = vld [vmem:[#allocation2 + $0x38] sm:$0xff] }
 0x17f   :  { %v388_v25 = vsel %vm385_vm2, %v387_v21, %v383_v24  ;;  %v403_v38 = vsel %vm402_vm6, %v1260_v63, %v399_v36  ;;  %vm1193_vm2 = vcmp.gt.s32.totalorder %v1531_v48, 4 }
 0x180   :  { %v411_v28 = vmul.f32 %v410_v23, %v388_v25  ;;  %v408_v47 = vsel %vm405_vm7, %v407_v42, %v403_v38 }
 0x182   :  { %v412_v33 = vadd.f32 %v411_v28, %v329_v27 }
 0x184   :  { %1261 = vtanh.f32 %v412_v33 }
 0x18a   :  { %v1262_v41 = vpop.eup %1261 }
 0x18b   :  { %v414_v45 = vsub.f32 %v1641_v32, %v1262_v41 }
 0x18d   :  { %v415_v50 = vmul.f32 %v414_v45, %v408_v47  ;;  %v432_v45 = vld [vmem:[#allocation2 + $0x40] sm:$0xff] }
 0x18f   :  { %v416_v54 = vadd.f32 %v1262_v41, %v415_v50 }
 0x191   :  { %v424_v55 = vsel %vm423_vm8, %v416_v54, 0.0  ;;  %v1677_v56 = vsel %vm423_vm8, %v416_v54, %v1641_v32 }
 0x192   :  { %426 = vst [vmem:[#allocation7 + $0x8] sm:$0xff] %v424_v55  ;;  %v433_v58 = vpack.c.bf16 %v1677_v56, %v1677_v56 }
 0x194   :  { %442 = vmatmul.bf16.vlgmr.msrb.gmra.mxu2 %v433_v58  ;;  %455 = vmatmul.bf16.vlgmr.msrb.gmra.mxu3 %v433_v58 }
 0x195   :  { %468 = vmatmul.bf16.vlgmr.msra.gmra.mxu0 %v433_v58  ;;  %666 = vmatpush.bf16.msrb.mxu2 %v1496_v18 }
 0x196   :  { %743 = vmatpush.bf16.msrb.mxu3 %v1485_v3  ;;  %756 = vmatpush.bf16.msra.mxu0 %v1487_v7 }
 0x199   :  { %667 = vmatpush.bf16.msrb.mxu2 %v1506_v26 }
 0x19a   :  { %744 = vmatpush.bf16.msrb.mxu3 %v1490_v10  ;;  %757 = vmatpush.bf16.msra.mxu0 %v1494_v11 }
 0x19d   :  { %668 = vmatpush.bf16.msrb.mxu2 %v1516_v35 }
 0x19e   :  { %745 = vmatpush.bf16.msrb.mxu3 %v1499_v19  ;;  %758 = vmatpush.bf16.msra.mxu0 %v1503_v22 }
 0x1a1   :  { %669 = vmatpush.bf16.msrb.mxu2 %v1526_v46 }
 0x1a2   :  { %746 = vmatpush.bf16.msrb.mxu3 %v1509_v30  ;;  %759 = vmatpush.bf16.msra.mxu0 %v1513_v31 }
 0x1a5   :  { %670 = vmatpush.bf16.msrb.mxu2 %v1545_v57 }
 0x1a6   :  { %747 = vmatpush.bf16.msrb.mxu3 %v1519_v39  ;;  %760 = vmatpush.bf16.msra.mxu0 %v1523_v44 }
 0x1a9   :  { %671 = vmatpush.bf16.msrb.mxu2 %v1556_v1 }
 0x1aa   :  { %748 = vmatpush.bf16.msrb.mxu3 %v1539_v51  ;;  %761 = vmatpush.bf16.msra.mxu0 %v1542_v53 }
 0x1ad   :  { %672 = vmatpush.bf16.msrb.mxu2 %v1567_v12 }
 0x1ae   :  { %749 = vmatpush.bf16.msrb.mxu3 %v1550_v60  ;;  %762 = vmatpush.bf16.msra.mxu0 %v1553_v62 }
 0x1b1   :  { %673 = vmatpush.bf16.msrb.mxu2 %v1574_v15 }
 0x1b2   :  { %750 = vmatpush.bf16.msrb.mxu3 %v1561_v8  ;;  %763 = vmatpush.bf16.msra.mxu0 %v1564_v9 }
 0x212   :  { %v469_v32 = vpop.f32.mrf.mxu0 }
 0x213   :  { %v513_v41 = vadd.f32 %v1638_v49, %v469_v32 }
 0x217   :  { %v443_v63 = vpop.f32.mrf.mxu2  ;;  %v456_v0 = vpop.f32.mrf.mxu3 }
 0x218   :  { %v473_v2 = vadd.f32 %v443_v63, %v430_v59  ;;  %v493_v4 = vadd.f32 %v456_v0, %v431_v61 }
 0x21a   :  { %v1185_v5 = vmul.f32 -1.442695, %v473_v2  ;;  %v1186_v6 = vmul.f32 -1.442695, %v493_v4  ;;  %v471_v13 = vpop.f32.mrf.mxu0  ;;  %v525_v4 = vpop.permute.xlu1 %524 }
 0x21b   :  { %vm526_vm1 = vcmp.eq.s32.totalorder %v525_v4, 1  ;;  %v535_v4 = vld [vmem:[#allocation2 + $0x58] sm:$0xff] }
 0x21c   :  { %1263 = vpow2.f32 %v1185_v5 }
 0x21d   :  { %1265 = vpow2.f32 %v1186_v6 }
 0x21f   :  { %v445_v14 = vpop.f32.mrf.mxu2  ;;  %v458_v16 = vpop.f32.mrf.mxu3 }
 0x222   :  { %v1264_v17 = vpop.eup %1263 }
 0x223   :  { %v1266_v20 = vpop.eup %1265  ;;  %v477_v21 = vadd.f32 1.0, %v1264_v17 }
 0x224   :  { %v497_v23 = vadd.f32 1.0, %v1266_v20 }
 0x225   :  { %1267 = vrcp.f32 %v477_v21  ;;  %v489_v29 = vand.u32 2147483648, %v477_v21  ;;  %v487_v36 = vand.u32 2147483647, %v477_v21  ;;  %vm483_vm10 = vweird.f32 %v477_v21 }
 0x226   :  { %1269 = vrcp.f32 %v497_v23  ;;  %v509_v58 = vand.u32 2147483648, %v497_v23  ;;  %vm503_vm14 = vweird.f32 %v497_v23  ;;  %v507_v59 = vand.u32 2147483647, %v497_v23 }
 0x227   :  { %v490_v40 = vor.u32 1.1754944e-38, %v489_v29  ;;  %vm488_vm12 = vcmp.eq.f32.partialorder %v487_v36, 8.507059e+37 }
 0x228   :  { %v510_v0 = vor.u32 1.1754944e-38, %v509_v58  ;;  %vm508_vm0 = vcmp.eq.f32.partialorder %v507_v59, 8.507059e+37 }
 0x22b   :  { %v1268_v24 = vpop.eup %1267 }
 0x22c   :  { %v1270_v25 = vpop.eup %1269  ;;  %v479_v27 = vmul.f32 %v1268_v24, %v477_v21  ;;  %vm484_vm9 = vweird.f32 %v1268_v24 }
 0x22d   :  { %v499_v33 = vmul.f32 %v1270_v25, %v497_v23  ;;  %vm485_vm11 = vmor %vm483_vm10, %vm484_vm9  ;;  %vm504_vm13 = vweird.f32 %v1270_v25  ;;  %v534_v23 = vld [vmem:[#allocation2 + $0x50] sm:$0xff] }
 0x22e   :  { %v480_v28 = vsub.f32 1.0, %v479_v27  ;;  %vm505_vm15 = vmor %vm503_vm14, %vm504_vm13 }
 0x22f   :  { %v500_v38 = vsub.f32 1.0, %v499_v33 }
 0x230   :  { %v481_v34 = vmul.f32 %v1268_v24, %v480_v28 }
 0x231   :  { %v501_v52 = vmul.f32 %v1270_v25, %v500_v38 }
 0x232   :  { %v482_v37 = vadd.f32 %v1268_v24, %v481_v34 }
 0x233   :  { %v502_v55 = vadd.f32 %v1270_v25, %v501_v52 }
 0x234   :  { %v486_v42 = vsel %vm485_vm11, %v1268_v24, %v482_v37 }
 0x235   :  { %v491_v47 = vsel %vm488_vm12, %v490_v40, %v486_v42  ;;  %v506_v61 = vsel %vm505_vm15, %v1270_v25, %v502_v55 }
 0x236   :  { %v514_v50 = vmul.f32 %v513_v41, %v491_v47  ;;  %v511_v2 = vsel %vm508_vm0, %v510_v0, %v506_v61 }
 0x238   :  { %v515_v54 = vadd.f32 %v514_v50, %v432_v45  ;;  %v728_v45 = vsel %vm1193_vm2, 1, %v1443_v43 }
 0x239   :  { %730 = vperm.xlu2 %1241, %v728_v45  }
 0x23a   :  { %1271 = vtanh.f32 %v515_v54 }
 0x240   :  { %v1272_v63 = vpop.eup %1271 }
 0x241   :  { %v517_v32 = vsub.f32 %v1677_v56, %v1272_v63 }
 0x243   :  { %v518_v5 = vmul.f32 %v517_v32, %v511_v2 }
 0x245   :  { %v519_v6 = vadd.f32 %v1272_v63, %v518_v5  ;;  %v831_v63 = vsel %vm1196_vm4, 1, %v1443_v43 }
 0x246   :  { %833 = vperm.xlu2 %1241, %v831_v63  }
 0x247   :  { %v527_v13 = vsel %vm526_vm1, %v519_v6, 0.0  ;;  %v1708_v14 = vsel %vm526_vm1, %v519_v6, %v1677_v56  ;;  %v533_v56 = vld [vmem:[#allocation2 + $0x48] sm:$0xff] }
 0x248   :  { %529 = vst [vmem:[#allocation7 + $0x10] sm:$0xff] %v527_v13  ;;  %v536_v16 = vpack.c.bf16 %v1708_v14, %v1708_v14 }
 0x24a   :  { %545 = vmatmul.bf16.vlgmr.msra.gmra.mxu1 %v536_v16  ;;  %558 = vmatmul.bf16.vlgmr.msra.gmra.mxu2 %v536_v16 }
 0x24b   :  { %571 = vmatmul.bf16.vlgmr.msra.gmra.mxu3 %v536_v16  ;;  %769 = vmatpush.bf16.msra.mxu1 %v1496_v18 }
 0x24c   :  { %846 = vmatpush.bf16.msra.mxu2 %v1485_v3  ;;  %859 = vmatpush.bf16.msra.mxu3 %v1487_v7 }
 0x24f   :  { %770 = vmatpush.bf16.msra.mxu1 %v1506_v26 }
 0x250   :  { %847 = vmatpush.bf16.msra.mxu2 %v1490_v10  ;;  %860 = vmatpush.bf16.msra.mxu3 %v1494_v11 }
 0x253   :  { %771 = vmatpush.bf16.msra.mxu1 %v1516_v35 }
 0x254   :  { %848 = vmatpush.bf16.msra.mxu2 %v1499_v19  ;;  %861 = vmatpush.bf16.msra.mxu3 %v1503_v22 }
 0x257   :  { %772 = vmatpush.bf16.msra.mxu1 %v1526_v46 }
 0x258   :  { %849 = vmatpush.bf16.msra.mxu2 %v1509_v30  ;;  %862 = vmatpush.bf16.msra.mxu3 %v1513_v31 }
 0x25b   :  { %773 = vmatpush.bf16.msra.mxu1 %v1545_v57 }
 0x25c   :  { %850 = vmatpush.bf16.msra.mxu2 %v1519_v39  ;;  %863 = vmatpush.bf16.msra.mxu3 %v1523_v44 }
 0x25f   :  { %774 = vmatpush.bf16.msra.mxu1 %v1556_v1 }
 0x260   :  { %851 = vmatpush.bf16.msra.mxu2 %v1539_v51  ;;  %864 = vmatpush.bf16.msra.mxu3 %v1542_v53 }
 0x263   :  { %775 = vmatpush.bf16.msra.mxu1 %v1567_v12 }
 0x264   :  { %852 = vmatpush.bf16.msra.mxu2 %v1550_v60  ;;  %865 = vmatpush.bf16.msra.mxu3 %v1553_v62 }
 0x267   :  { %776 = vmatpush.bf16.msra.mxu1 %v1574_v15 }
 0x268   :  { %853 = vmatpush.bf16.msra.mxu2 %v1561_v8  ;;  %866 = vmatpush.bf16.msra.mxu3 %v1564_v9 }
 0x2c7   :  { %v546_v17 = vpop.f32.mrf.mxu1 }
 0x2c8   :  { %v576_v20 = vadd.f32 %v546_v17, %v533_v56 }
 0x2ca   :  { %v1188_v21 = vmul.f32 -1.442695, %v576_v20 }
 0x2cc   :  { %1273 = vpow2.f32 %v1188_v21 }
 0x2cd   :  { %v559_v24 = vpop.f32.mrf.mxu2 }
 0x2ce   :  { %v596_v25 = vadd.f32 %v559_v24, %v534_v23  ;;  %v572_v27 = vpop.f32.mrf.mxu3 }
 0x2cf   :  { %v548_v28 = vpop.f32.mrf.mxu1  ;;  %v616_v2 = vadd.f32 %v1638_v49, %v572_v27  ;;  %v628_v27 = vpop.permute.xlu1 %627 }
 0x2d0   :  { %v1189_v29 = vmul.f32 -1.442695, %v596_v25  ;;  %vm629_vm12 = vcmp.eq.s32.totalorder %v628_v27, 1 }
 0x2d2   :  { %v1274_v33 = vpop.eup %1273  ;;  %1275 = vpow2.f32 %v1189_v29 }
 0x2d3   :  { %v580_v34 = vadd.f32 1.0, %v1274_v33 }
 0x2d5   :  { %1277 = vrcp.f32 %v580_v34  ;;  %v561_v36 = vpop.f32.mrf.mxu2  ;;  %v592_v50 = vand.u32 2147483648, %v580_v34  ;;  %v590_v54 = vand.u32 2147483647, %v580_v34  ;;  %vm586_vm5 = vweird.f32 %v580_v34 }
 0x2d6   :  { %v574_v37 = vpop.f32.mrf.mxu3 }
 0x2d7   :  { %v593_v61 = vor.u32 1.1754944e-38, %v592_v50  ;;  %vm591_vm7 = vcmp.eq.f32.partialorder %v590_v54, 8.507059e+37 }
 0x2d8   :  { %v1276_v40 = vpop.eup %1275 }
 0x2d9   :  { %v600_v38 = vadd.f32 1.0, %v1276_v40 }
 0x2db   :  { %v1278_v41 = vpop.eup %1277  ;;  %1279 = vrcp.f32 %v600_v38  ;;  %v612_v56 = vand.u32 2147483648, %v600_v38  ;;  %vm606_vm9 = vweird.f32 %v600_v38  ;;  %v610_v17 = vand.u32 2147483647, %v600_v38 }
 0x2dc   :  { %v582_v42 = vmul.f32 %v1278_v41, %v580_v34  ;;  %vm587_vm3 = vweird.f32 %v1278_v41 }
 0x2dd   :  { %vm588_vm6 = vmor %vm586_vm5, %vm587_vm3  ;;  %v613_v21 = vor.u32 1.1754944e-38, %v612_v56  ;;  %vm611_vm11 = vcmp.eq.f32.partialorder %v610_v17, 8.507059e+37  ;;  %v731_v56 = vpop.permute.xlu2 %730 }
 0x2de   :  { %v583_v47 = vsub.f32 1.0, %v582_v42  ;;  %vm732_vm5 = vcmp.eq.s32.totalorder %v731_v56, 1 }
 0x2e0   :  { %v584_v52 = vmul.f32 %v1278_v41, %v583_v47 }
 0x2e1   :  { %v1280_v55 = vpop.eup %1279 }
 0x2e2   :  { %v602_v58 = vmul.f32 %v1280_v55, %v600_v38  ;;  %v585_v59 = vadd.f32 %v1278_v41, %v584_v52  ;;  %vm607_vm8 = vweird.f32 %v1280_v55 }
 0x2e3   :  { %vm608_vm10 = vmor %vm606_vm9, %vm607_vm8 }
 0x2e4   :  { %v603_v0 = vsub.f32 1.0, %v602_v58  ;;  %v589_v32 = vsel %vm588_vm6, %v1278_v41, %v585_v59  ;;  %v638_v58 = vld [vmem:[#allocation2 + $0x70] sm:$0xff] }
 0x2e5   :  { %v594_v5 = vsel %vm591_vm7, %v593_v61, %v589_v32 }
 0x2e6   :  { %v617_v6 = vmul.f32 %v616_v2, %v594_v5  ;;  %v604_v13 = vmul.f32 %v1280_v55, %v603_v0 }
 0x2e8   :  { %v618_v16 = vadd.f32 %v617_v6, %v535_v4  ;;  %v605_v48 = vadd.f32 %v1280_v55, %v604_v13 }
 0x2ea   :  { %1281 = vtanh.f32 %v618_v16  ;;  %v609_v20 = vsel %vm608_vm10, %v1280_v55, %v605_v48 }
 0x2eb   :  { %v614_v24 = vsel %vm611_vm11, %v613_v21, %v609_v20 }
 0x2f0   :  { %v1282_v43 = vpop.eup %1281 }
 0x2f1   :  { %v620_v23 = vsub.f32 %v1708_v14, %v1282_v43 }
 0x2f3   :  { %v621_v25 = vmul.f32 %v620_v23, %v614_v24  ;;  %v740_v24 = vld [vmem:[#allocation2 + $0x80] sm:$0xff] }
 0x2f5   :  { %v622_v28 = vadd.f32 %v1282_v43, %v621_v25 }
 0x2f7   :  { %v630_v29 = vsel %vm629_vm12, %v622_v28, 0.0  ;;  %v1743_v33 = vsel %vm629_vm12, %v622_v28, %v1708_v14 }
 0x2f8   :  { %632 = vst [vmem:[#allocation7 + $0x18] sm:$0xff] %v630_v29  ;;  %v639_v34 = vpack.c.bf16 %v1743_v33, %v1743_v33 }
 0x2fa   :  { %648 = vmatmul.bf16.vlgmr.msrb.gmra.mxu0 %v639_v34  ;;  %661 = vmatmul.bf16.vlgmr.msrb.gmra.mxu1 %v639_v34 }
 0x2fb   :  { %674 = vmatmul.bf16.vlgmr.msrb.gmra.mxu2 %v639_v34  ;;  %872 = vmatpush.bf16.msrb.mxu0 %v1496_v18 }
 0x2fc   :  { %949 = vmatpush.bf16.msrb.mxu1 %v1485_v3  ;;  %962 = vmatpush.bf16.msrb.mxu2 %v1487_v7  ;;  %v636_v3 = vld [vmem:[#allocation2 + $0x60] sm:$0xff]  ;;  %v637_v7 = vld [vmem:[#allocation2 + $0x68] sm:$0xff] }
 0x2ff   :  { %873 = vmatpush.bf16.msrb.mxu0 %v1506_v26 }
 0x300   :  { %950 = vmatpush.bf16.msrb.mxu1 %v1490_v10  ;;  %963 = vmatpush.bf16.msrb.mxu2 %v1494_v11 }
 0x303   :  { %874 = vmatpush.bf16.msrb.mxu0 %v1516_v35 }
 0x304   :  { %951 = vmatpush.bf16.msrb.mxu1 %v1499_v19  ;;  %964 = vmatpush.bf16.msrb.mxu2 %v1503_v22 }
 0x307   :  { %875 = vmatpush.bf16.msrb.mxu0 %v1526_v46 }
 0x308   :  { %952 = vmatpush.bf16.msrb.mxu1 %v1509_v30  ;;  %965 = vmatpush.bf16.msrb.mxu2 %v1513_v31 }
 0x30b   :  { %876 = vmatpush.bf16.msrb.mxu0 %v1545_v57 }
 0x30c   :  { %953 = vmatpush.bf16.msrb.mxu1 %v1519_v39  ;;  %966 = vmatpush.bf16.msrb.mxu2 %v1523_v44 }
 0x30f   :  { %877 = vmatpush.bf16.msrb.mxu0 %v1556_v1 }
 0x310   :  { %954 = vmatpush.bf16.msrb.mxu1 %v1539_v51  ;;  %967 = vmatpush.bf16.msrb.mxu2 %v1542_v53 }
 0x313   :  { %878 = vmatpush.bf16.msrb.mxu0 %v1567_v12 }
 0x314   :  { %955 = vmatpush.bf16.msrb.mxu1 %v1550_v60  ;;  %968 = vmatpush.bf16.msrb.mxu2 %v1553_v62 }
 0x317   :  { %879 = vmatpush.bf16.msrb.mxu0 %v1574_v15 }
 0x318   :  { %956 = vmatpush.bf16.msrb.mxu1 %v1561_v8  ;;  %969 = vmatpush.bf16.msrb.mxu2 %v1564_v9 }
 0x377   :  { %v649_v10 = vpop.f32.mrf.mxu0  ;;  %v662_v11 = vpop.f32.mrf.mxu1 }
 0x378   :  { %v679_v19 = vadd.f32 %v649_v10, %v636_v3  ;;  %v699_v22 = vadd.f32 %v662_v11, %v637_v7 }
 0x37a   :  { %v1191_v30 = vmul.f32 -1.442695, %v679_v19  ;;  %v1192_v31 = vmul.f32 -1.442695, %v699_v22 }
 0x37c   :  { %1283 = vpow2.f32 %v1191_v30 }
 0x37d   :  { %1285 = vpow2.f32 %v1192_v31 }
 0x37e   :  { %v675_v39 = vpop.f32.mrf.mxu2 }
 0x37f   :  { %v651_v44 = vpop.f32.mrf.mxu0  ;;  %v664_v51 = vpop.f32.mrf.mxu1  ;;  %v719_v55 = vadd.f32 %v1638_v49, %v675_v39 }
 0x382   :  { %v1284_v53 = vpop.eup %1283 }
 0x383   :  { %v1286_v60 = vpop.eup %1285  ;;  %v683_v62 = vadd.f32 1.0, %v1284_v53 }
 0x384   :  { %v703_v14 = vadd.f32 1.0, %v1286_v60 }
 0x385   :  { %1287 = vrcp.f32 %v683_v62  ;;  %v695_v41 = vand.u32 2147483648, %v683_v62  ;;  %v693_v45 = vand.u32 2147483647, %v683_v62  ;;  %vm689_vm14 = vweird.f32 %v683_v62 }
 0x386   :  { %1289 = vrcp.f32 %v703_v14  ;;  %v677_v8 = vpop.f32.mrf.mxu2  ;;  %v715_v2 = vand.u32 2147483648, %v703_v14  ;;  %vm709_vm2 = vweird.f32 %v703_v14  ;;  %v713_v4 = vand.u32 2147483647, %v703_v14 }
 0x387   :  { %v696_v52 = vor.u32 1.1754944e-38, %v695_v41  ;;  %vm694_vm0 = vcmp.eq.f32.partialorder %v693_v45, 8.507059e+37 }
 0x388   :  { %v716_v13 = vor.u32 1.1754944e-38, %v715_v2  ;;  %vm714_vm4 = vcmp.eq.f32.partialorder %v713_v4, 8.507059e+37 }
 0x38b   :  { %v1288_v9 = vpop.eup %1287 }
 0x38c   :  { %v1290_v36 = vpop.eup %1289  ;;  %v685_v37 = vmul.f32 %v1288_v9, %v683_v62  ;;  %vm690_vm13 = vweird.f32 %v1288_v9 }
 0x38d   :  { %v705_v38 = vmul.f32 %v1290_v36, %v703_v14  ;;  %vm691_vm15 = vmor %vm689_vm14, %vm690_vm13  ;;  %vm710_vm1 = vweird.f32 %v1290_v36  ;;  %v741_v14 = vld [vmem:[#allocation2 + $0x88] sm:$0xff] }
 0x38e   :  { %v686_v40 = vsub.f32 1.0, %v685_v37  ;;  %vm711_vm3 = vmor %vm709_vm2, %vm710_vm1 }
 0x38f   :  { %v706_v50 = vsub.f32 1.0, %v705_v38 }
 0x390   :  { %v687_v42 = vmul.f32 %v1288_v9, %v686_v40 }
 0x391   :  { %v707_v63 = vmul.f32 %v1290_v36, %v706_v50 }
 0x392   :  { %v688_v47 = vadd.f32 %v1288_v9, %v687_v42 }
 0x393   :  { %v708_v32 = vadd.f32 %v1290_v36, %v707_v63 }
 0x394   :  { %v692_v54 = vsel %vm691_vm15, %v1288_v9, %v688_v47 }
 0x395   :  { %v697_v59 = vsel %vm694_vm0, %v696_v52, %v692_v54  ;;  %v712_v5 = vsel %vm711_vm3, %v1290_v36, %v708_v32  ;;  %v834_v52 = vpop.permute.xlu2 %833  ;;  %v843_v32 = vld [vmem:[#allocation2 + $0x98] sm:$0xff] }
 0x396   :  { %v720_v61 = vmul.f32 %v719_v55, %v697_v59  ;;  %v717_v48 = vsel %vm714_vm4, %v716_v13, %v712_v5  ;;  %vm835_vm14 = vcmp.eq.s32.totalorder %v834_v52, 1 }
 0x398   :  { %v721_v0 = vadd.f32 %v720_v61, %v638_v58 }
 0x39a   :  { %1291 = vtanh.f32 %v721_v0  ;;  %v842_v0 = vld [vmem:[#allocation2 + $0x90] sm:$0xff] }
 0x3a0   :  { %v1292_v6 = vpop.eup %1291 }
 0x3a1   :  { %v723_v16 = vsub.f32 %v1743_v33, %v1292_v6 }
 0x3a3   :  { %v724_v17 = vmul.f32 %v723_v16, %v717_v48 }
 0x3a5   :  { %v725_v20 = vadd.f32 %v1292_v6, %v724_v17 }
 0x3a7   :  { %v733_v43 = vsel %vm732_vm5, %v725_v20, 0.0  ;;  %v1774_v21 = vsel %vm732_vm5, %v725_v20, %v1743_v33 }
 0x3a8   :  { %735 = vst [vmem:[#allocation7 + $0x20] sm:$0xff] %v733_v43  ;;  %v742_v23 = vpack.c.bf16 %v1774_v21, %v1774_v21 }
 0x3aa   :  { %751 = vmatmul.bf16.vlgmr.msrb.gmra.mxu3 %v742_v23  ;;  %764 = vmatmul.bf16.vlgmr.msra.gmra.mxu0 %v742_v23 }
 0x3ab   :  { %777 = vmatmul.bf16.vlgmr.msra.gmra.mxu1 %v742_v23  ;;  %975 = vmatpush.bf16.msrb.mxu3 %v1496_v18  ;;  %v739_v18 = vld [vmem:[#allocation2 + $0x78] sm:$0xff] }
 0x3af   :  { %976 = vmatpush.bf16.msrb.mxu3 %v1506_v26 }
 0x3b3   :  { %977 = vmatpush.bf16.msrb.mxu3 %v1516_v35 }
 0x3b7   :  { %978 = vmatpush.bf16.msrb.mxu3 %v1526_v46 }
 0x3bb   :  { %979 = vmatpush.bf16.msrb.mxu3 %v1545_v57 }
 0x3bf   :  { %980 = vmatpush.bf16.msrb.mxu3 %v1556_v1 }
 0x3c3   :  { %981 = vmatpush.bf16.msrb.mxu3 %v1567_v12 }
 0x3c7   :  { %982 = vmatpush.bf16.msrb.mxu3 %v1574_v15 }
 0x427   :  { %v765_v25 = vpop.f32.mrf.mxu0 }
 0x428   :  { %v802_v27 = vadd.f32 %v765_v25, %v740_v24  ;;  %v778_v28 = vpop.f32.mrf.mxu1 }
 0x429   :  { %v822_v60 = vadd.f32 %v1638_v49, %v778_v28 }
 0x42a   :  { %v1195_v29 = vmul.f32 -1.442695, %v802_v27 }
 0x42c   :  { %1293 = vpow2.f32 %v1195_v29 }
 0x42d   :  { %v752_v33 = vpop.f32.mrf.mxu3 }
 0x42e   :  { %v782_v26 = vadd.f32 %v752_v33, %v739_v18 }
 0x42f   :  { %v767_v35 = vpop.f32.mrf.mxu0 }
 0x430   :  { %v1194_v34 = vmul.f32 -1.442695, %v782_v26  ;;  %v780_v46 = vpop.f32.mrf.mxu1 }
 0x432   :  { %1295 = vpow2.f32 %v1194_v34  ;;  %v1294_v57 = vpop.eup %1293 }
 0x433   :  { %v806_v7 = vadd.f32 1.0, %v1294_v57  ;;  %v1796_v57 = vld [vmem:[%s1817_s3] ss:$0 sm:$0xff]  ;;  %s1445_s3 = smov [#allocation7]  }
 0x434   :  { %s1051_s10 = sshll.u32 %s1445_s3, 4  ;;  %s1052_s10 = int_to_ptr.vmem [resolvable:$true] %s1051_s10 }
 0x435   :  { %v754_v3 = vpop.f32.mrf.mxu3  ;;  %v818_v38 = vand.u32 2147483648, %v806_v7  ;;  %vm812_vm11 = vweird.f32 %v806_v7  ;;  %v816_v41 = vand.u32 2147483647, %v806_v7 }
 0x437   :  { %v819_v47 = vor.u32 1.1754944e-38, %v818_v38  ;;  %vm817_vm13 = vcmp.eq.f32.partialorder %v816_v41, 8.507059e+37 }
 0x438   :  { %v1296_v1 = vpop.eup %1295 }
 0x439   :  { %v786_v12 = vadd.f32 1.0, %v1296_v1 }
 0x43b   :  { %1297 = vrcp.f32 %v786_v12  ;;  %v798_v30 = vand.u32 2147483648, %v786_v12  ;;  %v796_v39 = vand.u32 2147483647, %v786_v12  ;;  %vm792_vm7 = vweird.f32 %v786_v12 }
 0x43c   :  { %1299 = vrcp.f32 %v806_v7 }
 0x43d   :  { %v799_v53 = vor.u32 1.1754944e-38, %v798_v30  ;;  %vm797_vm9 = vcmp.eq.f32.partialorder %v796_v39, 8.507059e+37 }
 0x441   :  { %v1298_v15 = vpop.eup %1297 }
 0x442   :  { %v1300_v10 = vpop.eup %1299  ;;  %v788_v11 = vmul.f32 %v1298_v15, %v786_v12  ;;  %vm793_vm6 = vweird.f32 %v1298_v15 }
 0x443   :  { %v808_v22 = vmul.f32 %v1300_v10, %v806_v7  ;;  %vm794_vm8 = vmor %vm792_vm7, %vm793_vm6  ;;  %vm813_vm10 = vweird.f32 %v1300_v10  ;;  %v844_v7 = vld [vmem:[#allocation2 + $0xa0] sm:$0xff] }
 0x444   :  { %v789_v19 = vsub.f32 1.0, %v788_v11  ;;  %vm814_vm12 = vmor %vm812_vm11, %vm813_vm10 }
 0x445   :  { %v809_v51 = vsub.f32 1.0, %v808_v22 }
 0x446   :  { %v790_v31 = vmul.f32 %v1298_v15, %v789_v19 }
 0x447   :  { %v810_v36 = vmul.f32 %v1300_v10, %v809_v51 }
 0x448   :  { %v791_v44 = vadd.f32 %v1298_v15, %v790_v31 }
 0x449   :  { %v811_v40 = vadd.f32 %v1300_v10, %v810_v36 }
 0x44a   :  { %v795_v62 = vsel %vm794_vm8, %v1298_v15, %v791_v44 }
 0x44b   :  { %v800_v8 = vsel %vm797_vm9, %v799_v53, %v795_v62  ;;  %v815_v42 = vsel %vm814_vm12, %v1300_v10, %v811_v40 }
 0x44c   :  { %v823_v9 = vmul.f32 %v822_v60, %v800_v8  ;;  %v820_v50 = vsel %vm817_vm13, %v819_v47, %v815_v42  ;;  %v937_v60 = vpop.permute.xlu0 %936  ;;  %v946_v42 = vld [vmem:[#allocation2 + $0xb0] sm:$0xff] }
 0x44d   :  { %vm938_vm7 = vcmp.eq.s32.totalorder %v937_v60, 1 }
 0x44e   :  { %v824_v37 = vadd.f32 %v823_v9, %v741_v14 }
 0x450   :  { %1301 = vtanh.f32 %v824_v37  ;;  %v945_v37 = vld [vmem:[#allocation2 + $0xa8] sm:$0xff] }
 0x456   :  { %v1302_v45 = vpop.eup %1301 }
 0x457   :  { %v826_v49 = vsub.f32 %v1774_v21, %v1302_v45 }
 0x459   :  { %v827_v54 = vmul.f32 %v826_v49, %v820_v50 }
 0x45b   :  { %v828_v55 = vadd.f32 %v1302_v45, %v827_v54 }
 0x45d   :  { %v836_v58 = vsel %vm835_vm14, %v828_v55, 0.0  ;;  %v1789_v59 = vsel %vm835_vm14, %v828_v55, %v1774_v21 }
 0x45e   :  { %838 = vst [vmem:[#allocation7 + $0x28] sm:$0xff] %v836_v58  ;;  %v845_v61 = vpack.c.bf16 %v1789_v59, %v1789_v59 }
 0x460   :  { %854 = vmatmul.bf16.vlgmr.msra.gmra.mxu2 %v845_v61  ;;  %867 = vmatmul.bf16.vlgmr.msra.gmra.mxu3 %v845_v61 }
 0x461   :  { %880 = vmatmul.bf16.vlgmr.msrb.gmra.mxu0 %v845_v61 }
 0x4de   :  { %v881_v63 = vpop.f32.mrf.mxu0 }
 0x4df   :  { %v925_v3 = vadd.f32 %v1796_v57, %v881_v63 }
 0x4e3   :  { %v855_v2 = vpop.f32.mrf.mxu2  ;;  %v868_v4 = vpop.f32.mrf.mxu3 }
 0x4e4   :  { %v885_v5 = vadd.f32 %v855_v2, %v842_v0  ;;  %v905_v6 = vadd.f32 %v868_v4, %v843_v32 }
 0x4e6   :  { %v1197_v13 = vmul.f32 -1.442695, %v885_v5  ;;  %v1198_v16 = vmul.f32 -1.442695, %v905_v6  ;;  %v883_v48 = vpop.f32.mrf.mxu0 }
 0x4e8   :  { %1303 = vpow2.f32 %v1197_v13 }
 0x4e9   :  { %1305 = vpow2.f32 %v1198_v16 }
 0x4eb   :  { %v857_v56 = vpop.f32.mrf.mxu2  ;;  %v870_v17 = vpop.f32.mrf.mxu3 }
 0x4ee   :  { %v1304_v20 = vpop.eup %1303 }
 0x4ef   :  { %v1306_v43 = vpop.eup %1305  ;;  %v889_v21 = vadd.f32 1.0, %v1304_v20 }
 0x4f0   :  { %v909_v23 = vadd.f32 1.0, %v1306_v43 }
 0x4f1   :  { %1307 = vrcp.f32 %v889_v21  ;;  %v901_v29 = vand.u32 2147483648, %v889_v21  ;;  %v899_v26 = vand.u32 2147483647, %v889_v21  ;;  %vm895_vm0 = vweird.f32 %v889_v21 }
 0x4f2   :  { %1309 = vrcp.f32 %v909_v23  ;;  %v921_v22 = vand.u32 2147483648, %v909_v23  ;;  %vm915_vm4 = vweird.f32 %v909_v23  ;;  %v919_v30 = vand.u32 2147483647, %v909_v23 }
 0x4f3   :  { %v902_v34 = vor.u32 1.1754944e-38, %v901_v29  ;;  %vm900_vm2 = vcmp.eq.f32.partialorder %v899_v26, 8.507059e+37 }
 0x4f4   :  { %v922_v44 = vor.u32 1.1754944e-38, %v921_v22  ;;  %vm920_vm6 = vcmp.eq.f32.partialorder %v919_v30, 8.507059e+37 }
 0x4f7   :  { %v1308_v24 = vpop.eup %1307 }
 0x4f8   :  { %v1310_v25 = vpop.eup %1309  ;;  %v891_v27 = vmul.f32 %v1308_v24, %v889_v21  ;;  %vm896_vm15 = vweird.f32 %v1308_v24  ;;  %v947_v21 = vld [vmem:[#allocation2 + $0xb8] sm:$0xff] }
 0x4f9   :  { %v911_v18 = vmul.f32 %v1310_v25, %v909_v23  ;;  %vm897_vm1 = vmor %vm895_vm0, %vm896_vm15  ;;  %vm916_vm3 = vweird.f32 %v1310_v25 }
 0x4fa   :  { %v892_v28 = vsub.f32 1.0, %v891_v27  ;;  %vm917_vm5 = vmor %vm915_vm4, %vm916_vm3 }
 0x4fb   :  { %v912_v46 = vsub.f32 1.0, %v911_v18 }
 0x4fc   :  { %v893_v33 = vmul.f32 %v1308_v24, %v892_v28 }
 0x4fd   :  { %v913_v10 = vmul.f32 %v1310_v25, %v912_v46 }
 0x4fe   :  { %v894_v35 = vadd.f32 %v1308_v24, %v893_v33 }
 0x4ff   :  { %v914_v19 = vadd.f32 %v1310_v25, %v913_v10 }
 0x500   :  { %v898_v1 = vsel %vm897_vm1, %v1308_v24, %v894_v35 }
 0x501   :  { %v903_v12 = vsel %vm900_vm2, %v902_v34, %v898_v1  ;;  %v918_v31 = vsel %vm917_vm5, %v1310_v25, %v914_v19 }
 0x502   :  { %v926_v15 = vmul.f32 %v925_v3, %v903_v12  ;;  %v923_v53 = vsel %vm920_vm6, %v922_v44, %v918_v31 }
 0x504   :  { %v927_v11 = vadd.f32 %v926_v15, %v844_v7 }
 0x506   :  { %1311 = vtanh.f32 %v927_v11 }
 0x50c   :  { %v1312_v39 = vpop.eup %1311 }
 0x50d   :  { %v929_v51 = vsub.f32 %v1789_v59, %v1312_v39 }
 0x50f   :  { %v930_v62 = vmul.f32 %v929_v51, %v923_v53 }
 0x511   :  { %v931_v14 = vadd.f32 %v1312_v39, %v930_v62 }
 0x513   :  { %v939_v8 = vsel %vm938_vm7, %v931_v14, 0.0  ;;  %v1801_v9 = vsel %vm938_vm7, %v931_v14, %v1789_v59 }
 0x514   :  { %941 = vst [vmem:[#allocation7 + $0x30] sm:$0xff] %v939_v8  ;;  %v948_v36 = vpack.c.bf16 %v1801_v9, %v1801_v9 }
 0x516   :  { %957 = vmatmul.bf16.vlgmr.msrb.gmra.mxu1 %v948_v36  ;;  %970 = vmatmul.bf16.vlgmr.msrb.gmra.mxu2 %v948_v36 }
 0x517   :  { %983 = vmatmul.bf16.vlgmr.msrb.gmra.mxu3 %v948_v36 }
 0x593   :  { %v958_v40 = vpop.f32.mrf.mxu1 }
 0x594   :  { %v988_v38 = vadd.f32 %v958_v40, %v945_v37 }
 0x596   :  { %v1200_v41 = vmul.f32 -1.442695, %v988_v38 }
 0x598   :  { %1313 = vpow2.f32 %v1200_v41 }
 0x599   :  { %v971_v45 = vpop.f32.mrf.mxu2 }
 0x59a   :  { %v1008_v47 = vadd.f32 %v971_v45, %v946_v42  ;;  %v984_v49 = vpop.f32.mrf.mxu3 }
 0x59b   :  { %v960_v50 = vpop.f32.mrf.mxu1  ;;  %v1028_v43 = vadd.f32 %v1796_v57, %v984_v49  ;;  %v1040_v57 = vpop.permute.xlu1 %1039 }
 0x59c   :  { %v1201_v52 = vmul.f32 -1.442695, %v1008_v47  ;;  %vm1041_vm0 = vcmp.eq.s32.totalorder %v1040_v57, 1 }
 0x59e   :  { %v1314_v54 = vpop.eup %1313  ;;  %1315 = vpow2.f32 %v1201_v52 }
 0x59f   :  { %v992_v55 = vadd.f32 1.0, %v1314_v54 }
 0x5a1   :  { %1317 = vrcp.f32 %v992_v55  ;;  %v973_v58 = vpop.f32.mrf.mxu2  ;;  %v1004_v4 = vand.u32 2147483648, %v992_v55  ;;  %v1002_v6 = vand.u32 2147483647, %v992_v55  ;;  %vm998_vm9 = vweird.f32 %v992_v55 }
 0x5a2   :  { %v986_v59 = vpop.f32.mrf.mxu3 }
 0x5a3   :  { %v1005_v56 = vor.u32 1.1754944e-38, %v1004_v4  ;;  %vm1003_vm11 = vcmp.eq.f32.partialorder %v1002_v6, 8.507059e+37 }
 0x5a4   :  { %v1316_v61 = vpop.eup %1315 }
 0x5a5   :  { %v1012_v63 = vadd.f32 1.0, %v1316_v61 }
 0x5a7   :  { %v1318_v0 = vpop.eup %1317  ;;  %1319 = vrcp.f32 %v1012_v63  ;;  %v1024_v29 = vand.u32 2147483648, %v1012_v63  ;;  %vm1018_vm13 = vweird.f32 %v1012_v63  ;;  %v1022_v18 = vand.u32 2147483647, %v1012_v63 }
 0x5a8   :  { %v994_v32 = vmul.f32 %v1318_v0, %v992_v55  ;;  %vm999_vm8 = vweird.f32 %v1318_v0 }
 0x5a9   :  { %vm1000_vm10 = vmor %vm998_vm9, %vm999_vm8  ;;  %v1025_v35 = vor.u32 1.1754944e-38, %v1024_v29  ;;  %vm1023_vm15 = vcmp.eq.f32.partialorder %v1022_v18, 8.507059e+37 }
 0x5aa   :  { %v995_v2 = vsub.f32 1.0, %v994_v32 }
 0x5ac   :  { %v996_v5 = vmul.f32 %v1318_v0, %v995_v2 }
 0x5ad   :  { %v1320_v13 = vpop.eup %1319 }
 0x5ae   :  { %v1014_v16 = vmul.f32 %v1320_v13, %v1012_v63  ;;  %v997_v48 = vadd.f32 %v1318_v0, %v996_v5  ;;  %vm1019_vm12 = vweird.f32 %v1320_v13 }
 0x5af   :  { %vm1020_vm14 = vmor %vm1018_vm13, %vm1019_vm12 }
 0x5b0   :  { %v1015_v17 = vsub.f32 1.0, %v1014_v16  ;;  %v1001_v20 = vsel %vm1000_vm10, %v1318_v0, %v997_v48 }
 0x5b1   :  { %v1006_v23 = vsel %vm1003_vm11, %v1005_v56, %v1001_v20 }
 0x5b2   :  { %v1029_v24 = vmul.f32 %v1028_v43, %v1006_v23  ;;  %v1016_v25 = vmul.f32 %v1320_v13, %v1015_v17 }
 0x5b4   :  { %v1030_v27 = vadd.f32 %v1029_v24, %v947_v21  ;;  %v1017_v28 = vadd.f32 %v1320_v13, %v1016_v25 }
 0x5b6   :  { %1321 = vtanh.f32 %v1030_v27  ;;  %v1021_v33 = vsel %vm1020_vm14, %v1320_v13, %v1017_v28 }
 0x5b7   :  { %v1026_v46 = vsel %vm1023_vm15, %v1025_v35, %v1021_v33 }
 0x5bc   :  { %v1322_v26 = vpop.eup %1321 }
 0x5bd   :  { %v1032_v34 = vsub.f32 %v1801_v9, %v1322_v26 }
 0x5bf   :  { %v1033_v3 = vmul.f32 %v1032_v34, %v1026_v46 }
 0x5c1   :  { %v1034_v1 = vadd.f32 %v1322_v26, %v1033_v3 }
 0x5c3   :  { %v1042_v7 = vsel %vm1041_vm0, %v1034_v1, 0.0  ;;  %v1045_v12 = vsel %vm1041_vm0, %v1034_v1, %v1801_v9 }
 0x5c4   :  { %1044 = vst [vmem:[#allocation7 + $0x38] sm:$0xff] %v1042_v7 }
 0x5c5   :  { %1059 = dma.vmem_to_hbm [thread:$0]  %s1052_s10, 1024, %s1054_s13, [#allocation4], %s1447_s19, %s1447_s19, %s1448_s4   ;;  %1046 = vst [vmem:[#allocation8] sm:$0xff] %v1045_v12 }
 0x5c6   :  { %1070 = dma.vmem_to_hbm [thread:$0]  %s1066_s15, 128, %s1068_s18, [#allocation9]  }
 0x5c7   :  { %1433 = dma.done.wait [#allocation4], 1024  }
 0x5c8   :  { %1434 = vsyncadd [#allocation4], 4294966272 }
 0x5c9   :  { %1435 = dma.done.wait [#allocation9], 128  }
 0x5ca   :  { %1436 = vsyncadd [#allocation9], 4294967168 }
 0x5cb   :  { %1079 = vsyncpa [#allocation3], 1 }
 0x5cc   :  { %1080 = vsyncpa [#allocation6], 1 }
 0x5cd   :  { %1081 = vsyncpa [#allocation4], 1 }
 0x5ce   :  { %1082 = vsyncpa [#allocation9], 1 }

</bundles_post_ra>
